<compile_context>
chip_gen: v6e
topology: v6e:2x2x1
jax: 0.10.0
libtpu: 0.0.40
codegen_flags: <defaults>
</compile_context>

<pallas_src>
import jax
import jax.numpy as jnp
from jax.experimental import pallas as pl
from jax.experimental.pallas import tpu as pltpu

IN_CH = 1
IMG = 28
INPUT_SIZE = IN_CH * IMG * IMG   # 784
HIDDEN = 256
Z_DIM = 128


def _round_up(x, m):
    return (x + m - 1) // m * m


def _choose_tile(B):
    """Batch tile: small batches -> single minimal-padding step; larger
    batches -> tiles capped at 256 with >=2 grid steps (v7x dual-TC)."""
    B8 = _round_up(B, 8)
    if B8 <= 16:
        return B8
    return min(256, _round_up((B8 + 1) // 2, 8))


def _vae_kernel(
    x_ref,             # (TB, 784)  f32 input tile
    ew1_ref, eb1_ref,  # encoder fc1: (784, 256) bf16, (1, 256) f32
    ew2_ref, eb2_ref,  # encoder fc2: (256, 256) bf16, (1, 256) f32
    wml_ref, bml_ref,  # fused [fc_mu | fc_logvar]: (256, 256) bf16, (1, 256) f32
    dw1_ref, db1_ref,  # decoder fc1: (128, 256) bf16, (1, 256) f32
    dw2_ref, db2_ref,  # decoder fc2: (256, 256) bf16, (1, 256) f32
    dwo_ref, dbo_ref,  # decoder fc_out: (256, 784) bf16, (1, 784) f32
    eps_ref,           # (TB, 128) f32 ~ N(0, I), supplied from host (deterministic)
    out_ref,           # (TB, 784) f32 sigmoid output
    mulv_ref,          # (TB, 256) f32 = [mu | logvar]
):
    # ---- Encoder (bf16 MXU operands, f32 accumulation + elementwise) ----
    xb = x_ref[...].astype(jnp.bfloat16)
    h = jnp.dot(xb, ew1_ref[...],
                preferred_element_type=jnp.float32) + eb1_ref[...]
    h = jnp.maximum(h, 0.0).astype(jnp.bfloat16)
    h = jnp.dot(h, ew2_ref[...],
                preferred_element_type=jnp.float32) + eb2_ref[...]
    h = jnp.maximum(h, 0.0).astype(jnp.bfloat16)

    # ---- Fused mu / logvar projection: one full-width MXU matmul ----
    ml = jnp.dot(h, wml_ref[...],
                 preferred_element_type=jnp.float32) + bml_ref[...]
    mulv_ref[...] = ml

    mu = ml[:, :Z_DIM]            # lane-aligned 128-wide slices
    logvar = ml[:, Z_DIM:]

    # ---- Reparameterize (f32): z = mu + exp(0.5*logvar) * eps ----
    z = (mu + jnp.exp(0.5 * logvar) * eps_ref[...]).astype(jnp.bfloat16)

    # ---- Decoder ----
    d = jnp.dot(z, dw1_ref[...],
                preferred_element_type=jnp.float32) + db1_ref[...]
    d = jnp.maximum(d, 0.0).astype(jnp.bfloat16)
    d = jnp.dot(d, dw2_ref[...],
                preferred_element_type=jnp.float32) + db2_ref[...]
    d = jnp.maximum(d, 0.0).astype(jnp.bfloat16)
    logits = jnp.dot(d, dwo_ref[...],
                     preferred_element_type=jnp.float32) + dbo_ref[...]

    out_ref[...] = jax.nn.sigmoid(logits)


def prepare_params(params):
    """One-time parameter prep (hoisted out of the per-call forward):
    cast matmul weights to bf16, fuse fc_mu|fc_logvar, keep biases f32."""
    bf = jnp.bfloat16
    return dict(
        ew1=params["ew1"].astype(bf), eb1=params["eb1"],
        ew2=params["ew2"].astype(bf), eb2=params["eb2"],
        wml=jnp.concatenate([params["wmu"], params["wlv"]], axis=1).astype(bf),
        bml=jnp.concatenate([params["bmu"], params["blv"]], axis=1),
        dw1=params["dw1"].astype(bf), db1=params["db1"],
        dw2=params["dw2"].astype(bf), db2=params["db2"],
        dwo=params["dwo"].astype(bf), dbo=params["dbo"],
    )


def vae_forward(x_nchw, pparams, eps):
    """x_nchw: (B, 1, 28, 28) float32, pparams from prepare_params,
    eps: (B, 128) float32. Returns (out (B,1,28,28), mu, logvar)."""
    B = x_nchw.shape[0]
    x_flat = x_nchw.reshape(B, INPUT_SIZE)

    TB = _choose_tile(B)
    B_pad = _round_up(B, TB)
    grid = (B_pad // TB,)

    if B_pad != B:
        x_flat = jnp.pad(x_flat, ((0, B_pad - B), (0, 0)))
        eps = jnp.pad(eps, ((0, B_pad - B), (0, 0)))

    def batch_spec(cols):
        return pl.BlockSpec((TB, cols), lambda i: (i, 0))

    def resident(shape):
        # Whole array, same block every grid step -> DMA'd once, stays in VMEM.
        return pl.BlockSpec(shape, lambda i: (0,) * len(shape))

    in_specs = [
        batch_spec(INPUT_SIZE),                                   # x
        resident((INPUT_SIZE, HIDDEN)), resident((1, HIDDEN)),    # ew1, eb1
        resident((HIDDEN, HIDDEN)),     resident((1, HIDDEN)),    # ew2, eb2
        resident((HIDDEN, HIDDEN)),     resident((1, HIDDEN)),    # wml, bml
        resident((Z_DIM, HIDDEN)),      resident((1, HIDDEN)),    # dw1, db1
        resident((HIDDEN, HIDDEN)),     resident((1, HIDDEN)),    # dw2, db2
        resident((HIDDEN, INPUT_SIZE)), resident((1, INPUT_SIZE)),# dwo, dbo
        batch_spec(Z_DIM),                                        # eps
    ]
    out_specs = (batch_spec(INPUT_SIZE), batch_spec(2 * Z_DIM))

    out_pad, mulv_pad = pl.pallas_call(
        _vae_kernel,
        out_shape=(
            jax.ShapeDtypeStruct((B_pad, INPUT_SIZE), jnp.float32),
            jax.ShapeDtypeStruct((B_pad, 2 * Z_DIM), jnp.float32),
        ),
        grid=grid,
        in_specs=in_specs,
        out_specs=out_specs,
        compiler_params=pltpu.CompilerParams(
            dimension_semantics=("parallel",),   # shard batch grid over TCs (v7x)
            vmem_limit_bytes=16 << 20,           # bf16 weights + <=256-row tiles fit easily
        ),
    )(
        x_flat,
        pparams["ew1"], pparams["eb1"],
        pparams["ew2"], pparams["eb2"],
        pparams["wml"], pparams["bml"],
        pparams["dw1"], pparams["db1"],
        pparams["dw2"], pparams["db2"],
        pparams["dwo"], pparams["dbo"],
        eps,
    )

    out = out_pad[:B].reshape(B, IN_CH, IMG, IMG)   # contiguous crop, no column slice
    mu = mulv_pad[:B, :Z_DIM]
    logvar = mulv_pad[:B, Z_DIM:]
    return out, mu, logvar


def init_params(key):
    """Deterministic init: uniform(-1/sqrt(fan_in), 1/sqrt(fan_in)) like PyTorch."""
    def linear(key, fan_in, fan_out):
        kw, kb = jax.random.split(key)
        bound = 1.0 / jnp.sqrt(fan_in)
        w = jax.random.uniform(kw, (fan_in, fan_out), jnp.float32, -bound, bound)
        b = jax.random.uniform(kb, (1, fan_out), jnp.float32, -bound, bound)
        return w, b

    keys = jax.random.split(key, 7)
    ew1, eb1 = linear(keys[0], INPUT_SIZE, HIDDEN)
    ew2, eb2 = linear(keys[1], HIDDEN, HIDDEN)
    wmu, bmu = linear(keys[2], HIDDEN, Z_DIM)
    wlv, blv = linear(keys[3], HIDDEN, Z_DIM)
    dw1, db1 = linear(keys[4], Z_DIM, HIDDEN)
    dw2, db2 = linear(keys[5], HIDDEN, HIDDEN)
    dwo, dbo = linear(keys[6], HIDDEN, INPUT_SIZE)
    return dict(ew1=ew1, eb1=eb1, ew2=ew2, eb2=eb2,
                wmu=wmu, bmu=bmu, wlv=wlv, blv=blv,
                dw1=dw1, db1=db1, dw2=dw2, db2=db2,
                dwo=dwo, dbo=dbo)


def reference_forward(x_nchw, params, eps):
    """Pure-JAX f32 reference for correctness checking (unfused)."""
    B = x_nchw.shape[0]
    x = x_nchw.reshape(B, INPUT_SIZE)
    h = jax.nn.relu(x @ params["ew1"] + params["eb1"])
    h = jax.nn.relu(h @ params["ew2"] + params["eb2"])
    mu = h @ params["wmu"] + params["bmu"]
    logvar = h @ params["wlv"] + params["blv"]
    z = mu + jnp.exp(0.5 * logvar) * eps
    d = jax.nn.relu(z @ params["dw1"] + params["db1"])
    d = jax.nn.relu(d @ params["dw2"] + params["db2"])
    out = jax.nn.sigmoid(d @ params["dwo"] + params["dbo"])
    return out.reshape(B, IN_CH, IMG, IMG), mu, logvar


if __name__ == "__main__":
    key = jax.random.PRNGKey(0)
    k_x, k_p, k_eps = jax.random.split(key, 3)

    B = 8
    x = jax.random.normal(k_x, (B, IN_CH, IMG, IMG), jnp.float32)
    params = init_params(k_p)
    pparams = prepare_params(params)   # one-time bf16 cast + mu|logvar fusion
    # The noise eps ~ N(0, I) (torch.randn_like in reparameterize) is generated
    # on host for determinism and passed in.
    # TODO(synk): could be generated in-kernel via pltpu.prng_seed/prng_random_bits
    # if bitwise parity with host randn is not required.
    eps = jax.random.normal(k_eps, (B, Z_DIM), jnp.float32)

    out, mu, logvar = jax.block_until_ready(vae_forward(x, pparams, eps))

    ref_out, ref_mu, ref_lv = reference_forward(x, params, eps)
    assert out.shape == (B, IN_CH, IMG, IMG)
    assert mu.shape == (B, Z_DIM) and logvar.shape == (B, Z_DIM)
    # bf16 matmul operands (f32 accumulation) -> relaxed tolerance vs f32 ref.
    assert jnp.allclose(out, ref_out, atol=3e-2, rtol=3e-2)
    assert jnp.allclose(mu, ref_mu, atol=3e-2, rtol=3e-2)
    assert jnp.allclose(logvar, ref_lv, atol=3e-2, rtol=3e-2)

    print("KERNEL_OK")
</pallas_src>

<mosaic_0001>
module attributes {stable_mosaic.version = 11 : i64} {
  func.func @_vae_kernel(%arg0: i32, %arg1: memref<8x784xf32, #tpu.memory_space<vmem>>, %arg2: memref<784x256xbf16, #tpu.memory_space<vmem>>, %arg3: memref<1x256xf32, #tpu.memory_space<vmem>>, %arg4: memref<256x256xbf16, #tpu.memory_space<vmem>>, %arg5: memref<1x256xf32, #tpu.memory_space<vmem>>, %arg6: memref<256x256xbf16, #tpu.memory_space<vmem>>, %arg7: memref<1x256xf32, #tpu.memory_space<vmem>>, %arg8: memref<128x256xbf16, #tpu.memory_space<vmem>>, %arg9: memref<1x256xf32, #tpu.memory_space<vmem>>, %arg10: memref<256x256xbf16, #tpu.memory_space<vmem>>, %arg11: memref<1x256xf32, #tpu.memory_space<vmem>>, %arg12: memref<256x784xbf16, #tpu.memory_space<vmem>>, %arg13: memref<1x784xf32, #tpu.memory_space<vmem>>, %arg14: memref<8x128xf32, #tpu.memory_space<vmem>>, %arg15: memref<8x784xf32, #tpu.memory_space<vmem>>, %arg16: memref<8x256xf32, #tpu.memory_space<vmem>>) attributes {dimension_semantics = [#tpu.dimension_semantics<parallel>], iteration_bounds = array<i64: 1>, scalar_prefetch = 0 : i64, scratch_operands = 0 : i64, tpu.core_type = #tpu.core_type<tc>, window_params = [{transform_indices = @transform_0, window_bounds = array<i64: 8, 784>}, {pipeline_mode = #tpu.pipeline_mode<synchronous>, transform_indices = @transform_1, window_bounds = array<i64: 784, 256>}, {pipeline_mode = #tpu.pipeline_mode<synchronous>, transform_indices = @transform_2, window_bounds = array<i64: 1, 256>}, {pipeline_mode = #tpu.pipeline_mode<synchronous>, transform_indices = @transform_3, window_bounds = array<i64: 256, 256>}, {pipeline_mode = #tpu.pipeline_mode<synchronous>, transform_indices = @transform_4, window_bounds = array<i64: 1, 256>}, {pipeline_mode = #tpu.pipeline_mode<synchronous>, transform_indices = @transform_5, window_bounds = array<i64: 256, 256>}, {pipeline_mode = #tpu.pipeline_mode<synchronous>, transform_indices = @transform_6, window_bounds = array<i64: 1, 256>}, {pipeline_mode = #tpu.pipeline_mode<synchronous>, transform_indices = @transform_7, window_bounds = array<i64: 128, 256>}, {pipeline_mode = #tpu.pipeline_mode<synchronous>, transform_indices = @transform_8, window_bounds = array<i64: 1, 256>}, {pipeline_mode = #tpu.pipeline_mode<synchronous>, transform_indices = @transform_9, window_bounds = array<i64: 256, 256>}, {pipeline_mode = #tpu.pipeline_mode<synchronous>, transform_indices = @transform_10, window_bounds = array<i64: 1, 256>}, {pipeline_mode = #tpu.pipeline_mode<synchronous>, transform_indices = @transform_11, window_bounds = array<i64: 256, 784>}, {pipeline_mode = #tpu.pipeline_mode<synchronous>, transform_indices = @transform_12, window_bounds = array<i64: 1, 784>}, {transform_indices = @transform_13, window_bounds = array<i64: 8, 128>}, {transform_indices = @transform_14, window_bounds = array<i64: 8, 784>}, {transform_indices = @transform_15, window_bounds = array<i64: 8, 256>}]} {
    %c0 = arith.constant 0 : index
    %c0_0 = arith.constant 0 : index
    %0 = vector.load %arg1[%c0, %c0_0] : memref<8x784xf32, #tpu.memory_space<vmem>>, vector<8x784xf32>
    %1 = arith.truncf %0 : vector<8x784xf32> to vector<8x784xbf16>
    %c0_1 = arith.constant 0 : index
    %c0_2 = arith.constant 0 : index
    %2 = vector.load %arg2[%c0_1, %c0_2] : memref<784x256xbf16, #tpu.memory_space<vmem>>, vector<784x256xbf16>
    %cst = arith.constant dense<0.000000e+00> : vector<8x256xf32>
    %3 = tpu.matmul %1, %2, %cst {dimension_numbers = #tpu.dot_dimension_numbers<[1], [0], [0], [1], [0, 0, 1, 1], [], []>} : vector<8x784xbf16>, vector<784x256xbf16>, vector<8x256xf32> -> vector<8x256xf32>
    %c0_3 = arith.constant 0 : index
    %c0_4 = arith.constant 0 : index
    %4 = vector.load %arg3[%c0_3, %c0_4] : memref<1x256xf32, #tpu.memory_space<vmem>>, vector<1x256xf32>
    %5 = vector.broadcast %4 : vector<1x256xf32> to vector<8x256xf32>
    %6 = arith.addf %3, %5 : vector<8x256xf32>
    %cst_5 = arith.constant 0.000000e+00 : f32
    %7 = vector.broadcast %cst_5 : f32 to vector<8x256xf32>
    %8 = arith.maximumf %6, %7 : vector<8x256xf32>
    %9 = arith.truncf %8 : vector<8x256xf32> to vector<8x256xbf16>
    %c0_6 = arith.constant 0 : index
    %c0_7 = arith.constant 0 : index
    %10 = vector.load %arg4[%c0_6, %c0_7] : memref<256x256xbf16, #tpu.memory_space<vmem>>, vector<256x256xbf16>
    %cst_8 = arith.constant dense<0.000000e+00> : vector<8x256xf32>
    %11 = tpu.matmul %9, %10, %cst_8 {dimension_numbers = #tpu.dot_dimension_numbers<[1], [0], [0], [1], [0, 0, 1, 1], [], []>} : vector<8x256xbf16>, vector<256x256xbf16>, vector<8x256xf32> -> vector<8x256xf32>
    %c0_9 = arith.constant 0 : index
    %c0_10 = arith.constant 0 : index
    %12 = vector.load %arg5[%c0_9, %c0_10] : memref<1x256xf32, #tpu.memory_space<vmem>>, vector<1x256xf32>
    %13 = vector.broadcast %12 : vector<1x256xf32> to vector<8x256xf32>
    %14 = arith.addf %11, %13 : vector<8x256xf32>
    %cst_11 = arith.constant 0.000000e+00 : f32
    %15 = vector.broadcast %cst_11 : f32 to vector<8x256xf32>
    %16 = arith.maximumf %14, %15 : vector<8x256xf32>
    %17 = arith.truncf %16 : vector<8x256xf32> to vector<8x256xbf16>
    %c0_12 = arith.constant 0 : index
    %c0_13 = arith.constant 0 : index
    %18 = vector.load %arg6[%c0_12, %c0_13] : memref<256x256xbf16, #tpu.memory_space<vmem>>, vector<256x256xbf16>
    %cst_14 = arith.constant dense<0.000000e+00> : vector<8x256xf32>
    %19 = tpu.matmul %17, %18, %cst_14 {dimension_numbers = #tpu.dot_dimension_numbers<[1], [0], [0], [1], [0, 0, 1, 1], [], []>} : vector<8x256xbf16>, vector<256x256xbf16>, vector<8x256xf32> -> vector<8x256xf32>
    %c0_15 = arith.constant 0 : index
    %c0_16 = arith.constant 0 : index
    %20 = vector.load %arg7[%c0_15, %c0_16] : memref<1x256xf32, #tpu.memory_space<vmem>>, vector<1x256xf32>
    %21 = vector.broadcast %20 : vector<1x256xf32> to vector<8x256xf32>
    %22 = arith.addf %19, %21 : vector<8x256xf32>
    %c0_17 = arith.constant 0 : index
    %c0_18 = arith.constant 0 : index
    %23 = vector.load %arg16[%c0_17, %c0_18] : memref<8x256xf32, #tpu.memory_space<vmem>>, vector<8x256xf32>
    tpu.vector_store %arg16[%c0_17, %c0_18], %22 {strides = array<i32>} : memref<8x256xf32, #tpu.memory_space<vmem>>, vector<8x256xf32>,
    %24 = vector.extract_strided_slice %22 {offsets = [0, 0], sizes = [8, 128], strides = [1, 1]} : vector<8x256xf32> to vector<8x128xf32>
    %25 = vector.extract_strided_slice %22 {offsets = [0, 128], sizes = [8, 128], strides = [1, 1]} : vector<8x256xf32> to vector<8x128xf32>
    %cst_19 = arith.constant 5.000000e-01 : f32
    %26 = vector.broadcast %cst_19 : f32 to vector<8x128xf32>
    %27 = arith.mulf %26, %25 : vector<8x128xf32>
    %28 = math.exp %27 : vector<8x128xf32>
    %c0_20 = arith.constant 0 : index
    %c0_21 = arith.constant 0 : index
    %29 = vector.load %arg14[%c0_20, %c0_21] : memref<8x128xf32, #tpu.memory_space<vmem>>, vector<8x128xf32>
    %30 = arith.mulf %28, %29 : vector<8x128xf32>
    %31 = arith.addf %24, %30 : vector<8x128xf32>
    %32 = arith.truncf %31 : vector<8x128xf32> to vector<8x128xbf16>
    %c0_22 = arith.constant 0 : index
    %c0_23 = arith.constant 0 : index
    %33 = vector.load %arg8[%c0_22, %c0_23] : memref<128x256xbf16, #tpu.memory_space<vmem>>, vector<128x256xbf16>
    %cst_24 = arith.constant dense<0.000000e+00> : vector<8x256xf32>
    %34 = tpu.matmul %32, %33, %cst_24 {dimension_numbers = #tpu.dot_dimension_numbers<[1], [0], [0], [1], [0, 0, 1, 1], [], []>} : vector<8x128xbf16>, vector<128x256xbf16>, vector<8x256xf32> -> vector<8x256xf32>
    %c0_25 = arith.constant 0 : index
    %c0_26 = arith.constant 0 : index
    %35 = vector.load %arg9[%c0_25, %c0_26] : memref<1x256xf32, #tpu.memory_space<vmem>>, vector<1x256xf32>
    %36 = vector.broadcast %35 : vector<1x256xf32> to vector<8x256xf32>
    %37 = arith.addf %34, %36 : vector<8x256xf32>
    %cst_27 = arith.constant 0.000000e+00 : f32
    %38 = vector.broadcast %cst_27 : f32 to vector<8x256xf32>
    %39 = arith.maximumf %37, %38 : vector<8x256xf32>
    %40 = arith.truncf %39 : vector<8x256xf32> to vector<8x256xbf16>
    %c0_28 = arith.constant 0 : index
    %c0_29 = arith.constant 0 : index
    %41 = vector.load %arg10[%c0_28, %c0_29] : memref<256x256xbf16, #tpu.memory_space<vmem>>, vector<256x256xbf16>
    %cst_30 = arith.constant dense<0.000000e+00> : vector<8x256xf32>
    %42 = tpu.matmul %40, %41, %cst_30 {dimension_numbers = #tpu.dot_dimension_numbers<[1], [0], [0], [1], [0, 0, 1, 1], [], []>} : vector<8x256xbf16>, vector<256x256xbf16>, vector<8x256xf32> -> vector<8x256xf32>
    %c0_31 = arith.constant 0 : index
    %c0_32 = arith.constant 0 : index
    %43 = vector.load %arg11[%c0_31, %c0_32] : memref<1x256xf32, #tpu.memory_space<vmem>>, vector<1x256xf32>
    %44 = vector.broadcast %43 : vector<1x256xf32> to vector<8x256xf32>
    %45 = arith.addf %42, %44 : vector<8x256xf32>
    %cst_33 = arith.constant 0.000000e+00 : f32
    %46 = vector.broadcast %cst_33 : f32 to vector<8x256xf32>
    %47 = arith.maximumf %45, %46 : vector<8x256xf32>
    %48 = arith.truncf %47 : vector<8x256xf32> to vector<8x256xbf16>
    %c0_34 = arith.constant 0 : index
    %c0_35 = arith.constant 0 : index
    %49 = vector.load %arg12[%c0_34, %c0_35] : memref<256x784xbf16, #tpu.memory_space<vmem>>, vector<256x784xbf16>
    %cst_36 = arith.constant dense<0.000000e+00> : vector<8x784xf32>
    %50 = tpu.matmul %48, %49, %cst_36 {dimension_numbers = #tpu.dot_dimension_numbers<[1], [0], [0], [1], [0, 0, 1, 1], [], []>} : vector<8x256xbf16>, vector<256x784xbf16>, vector<8x784xf32> -> vector<8x784xf32>
    %c0_37 = arith.constant 0 : index
    %c0_38 = arith.constant 0 : index
    %51 = vector.load %arg13[%c0_37, %c0_38] : memref<1x784xf32, #tpu.memory_space<vmem>>, vector<1x784xf32>
    %52 = vector.broadcast %51 : vector<1x784xf32> to vector<8x784xf32>
    %53 = arith.addf %50, %52 : vector<8x784xf32>
    %54 = arith.negf %53 : vector<8x784xf32>
    %55 = math.exp %54 : vector<8x784xf32>
    %cst_39 = arith.constant 1.000000e+00 : f32
    %56 = vector.broadcast %cst_39 : f32 to vector<8x784xf32>
    %57 = arith.addf %56, %55 : vector<8x784xf32>
    %58 = arith.divf %56, %57 : vector<8x784xf32>
    %c0_40 = arith.constant 0 : index
    %c0_41 = arith.constant 0 : index
    %59 = vector.load %arg15[%c0_40, %c0_41] : memref<8x784xf32, #tpu.memory_space<vmem>>, vector<8x784xf32>
    tpu.vector_store %arg15[%c0_40, %c0_41], %58 {strides = array<i32>} : memref<8x784xf32, #tpu.memory_space<vmem>>, vector<8x784xf32>,
    return
  }
  func.func @transform_0(%arg0: i32) -> (i32, i32) {
    %c0_i32 = arith.constant 0 : i32
    %c0_i32_0 = arith.constant 0 : i32
    return %arg0, %c0_i32 : i32, i32
  }
  func.func @transform_1(%arg0: i32) -> (i32, i32) {
    %c0_i32 = arith.constant 0 : i32
    %c0_i32_0 = arith.constant 0 : i32
    %c0_i32_1 = arith.constant 0 : i32
    return %c0_i32, %c0_i32_0 : i32, i32
  }
  func.func @transform_2(%arg0: i32) -> (i32, i32) {
    %c0_i32 = arith.constant 0 : i32
    %c0_i32_0 = arith.constant 0 : i32
    %c0_i32_1 = arith.constant 0 : i32
    return %c0_i32, %c0_i32_0 : i32, i32
  }
  func.func @transform_3(%arg0: i32) -> (i32, i32) {
    %c0_i32 = arith.constant 0 : i32
    %c0_i32_0 = arith.constant 0 : i32
    %c0_i32_1 = arith.constant 0 : i32
    return %c0_i32, %c0_i32_0 : i32, i32
  }
  func.func @transform_4(%arg0: i32) -> (i32, i32) {
    %c0_i32 = arith.constant 0 : i32
    %c0_i32_0 = arith.constant 0 : i32
    %c0_i32_1 = arith.constant 0 : i32
    return %c0_i32, %c0_i32_0 : i32, i32
  }
  func.func @transform_5(%arg0: i32) -> (i32, i32) {
    %c0_i32 = arith.constant 0 : i32
    %c0_i32_0 = arith.constant 0 : i32
    %c0_i32_1 = arith.constant 0 : i32
    return %c0_i32, %c0_i32_0 : i32, i32
  }
  func.func @transform_6(%arg0: i32) -> (i32, i32) {
    %c0_i32 = arith.constant 0 : i32
    %c0_i32_0 = arith.constant 0 : i32
    %c0_i32_1 = arith.constant 0 : i32
    return %c0_i32, %c0_i32_0 : i32, i32
  }
  func.func @transform_7(%arg0: i32) -> (i32, i32) {
    %c0_i32 = arith.constant 0 : i32
    %c0_i32_0 = arith.constant 0 : i32
    %c0_i32_1 = arith.constant 0 : i32
    return %c0_i32, %c0_i32_0 : i32, i32
  }
  func.func @transform_8(%arg0: i32) -> (i32, i32) {
    %c0_i32 = arith.constant 0 : i32
    %c0_i32_0 = arith.constant 0 : i32
    %c0_i32_1 = arith.constant 0 : i32
    return %c0_i32, %c0_i32_0 : i32, i32
  }
  func.func @transform_9(%arg0: i32) -> (i32, i32) {
    %c0_i32 = arith.constant 0 : i32
    %c0_i32_0 = arith.constant 0 : i32
    %c0_i32_1 = arith.constant 0 : i32
    return %c0_i32, %c0_i32_0 : i32, i32
  }
  func.func @transform_10(%arg0: i32) -> (i32, i32) {
    %c0_i32 = arith.constant 0 : i32
    %c0_i32_0 = arith.constant 0 : i32
    %c0_i32_1 = arith.constant 0 : i32
    return %c0_i32, %c0_i32_0 : i32, i32
  }
  func.func @transform_11(%arg0: i32) -> (i32, i32) {
    %c0_i32 = arith.constant 0 : i32
    %c0_i32_0 = arith.constant 0 : i32
    %c0_i32_1 = arith.constant 0 : i32
    return %c0_i32, %c0_i32_0 : i32, i32
  }
  func.func @transform_12(%arg0: i32) -> (i32, i32) {
    %c0_i32 = arith.constant 0 : i32
    %c0_i32_0 = arith.constant 0 : i32
    %c0_i32_1 = arith.constant 0 : i32
    return %c0_i32, %c0_i32_0 : i32, i32
  }
  func.func @transform_13(%arg0: i32) -> (i32, i32) {
    %c0_i32 = arith.constant 0 : i32
    %c0_i32_0 = arith.constant 0 : i32
    return %arg0, %c0_i32 : i32, i32
  }
  func.func @transform_14(%arg0: i32) -> (i32, i32) {
    %c0_i32 = arith.constant 0 : i32
    %c0_i32_0 = arith.constant 0 : i32
    return %arg0, %c0_i32 : i32, i32
  }
  func.func @transform_15(%arg0: i32) -> (i32, i32) {
    %c0_i32 = arith.constant 0 : i32
    %c0_i32_0 = arith.constant 0 : i32
    return %arg0, %c0_i32 : i32, i32
  }
}

</mosaic_0001>

<bundles_post_ra>
// kernel: tpu_custom_call.1
= control target key start
LH: loop header
LB: loop body
LE: loop exit
PB: predicated region body
PF: predicated region fallthrough
CT: control target
= control target key end

     0   :  { %21 = vsyncpa [#allocation3], 0  ;;  %s4919_s0 = inlined_call_operand.hbm [shape: f32[8,784], index: 0, kind: input, shape index: {}]   ;;  %s4920_s1 = inlined_call_operand.vmem [shape: bf16[784,256], index: 1, kind: input, shape index: {}]   ;;  %s4921_s2 = inlined_call_operand.hbm [shape: f32[1,256], index: 2, kind: input, shape index: {}]   ;;  %s4922_s3 = inlined_call_operand.vmem [shape: bf16[256,256], index: 3, kind: input, shape index: {}]   ;;  %s4923_s4 = inlined_call_operand.hbm [shape: f32[1,256], index: 4, kind: input, shape index: {}]   ;;  %s4924_s5 = inlined_call_operand.vmem [shape: bf16[256,256], index: 5, kind: input, shape index: {}]   ;;  %s4925_s6 = inlined_call_operand.hbm [shape: f32[1,256], index: 6, kind: input, shape index: {}]   ;;  %s4926_s7 = inlined_call_operand.vmem [shape: bf16[128,256], index: 7, kind: input, shape index: {}]   ;;  %s4927_s8 = inlined_call_operand.hbm [shape: f32[1,256], index: 8, kind: input, shape index: {}]   ;;  %s4928_s9 = inlined_call_operand.vmem [shape: bf16[256,256], index: 9, kind: input, shape index: {}]   ;;  %s4929_s10 = inlined_call_operand.vmem [shape: f32[1,256], index: 10, kind: input, shape index: {}]   ;;  %s4930_s11 = inlined_call_operand.vmem [shape: bf16[256,784], index: 11, kind: input, shape index: {}]   ;;  %s4931_s12 = inlined_call_operand.vmem [shape: f32[1,784], index: 12, kind: input, shape index: {}]   ;;  %s4932_s13 = inlined_call_operand.vmem [shape: f32[8,128], index: 13, kind: input, shape index: {}]   ;;  %s4933_s14 = inlined_call_operand.hbm [shape: f32[8,784], index: 14, kind: output, shape index: {0}]   ;;  %s4934_s15 = inlined_call_operand.hbm [shape: f32[8,256], index: 15, kind: output, shape index: {1}]  }
   0x1   :  { %22 = vsyncpa [#allocation6], 0 }
   0x2   :  { %23 = vsyncpa [#allocation9], 0 }
   0x3   :  { %24 = vsyncpa [#allocation4], 0 }
   0x4   :  { %25 = vsyncpa [#allocation13], 0  ;;  %s3800_s18 = smov [#allocation5]   ;;  %s3801_s20 = smov [#allocation8]  }
   0x5   :  { %s44_s19 = sshll.u32 %s3800_s18, 4  ;;  %s68_s21 = sshll.u32 %s3801_s20, 4  ;;  %s45_s19 = int_to_ptr.vmem [resolvable:$true] %s44_s19  ;;  %s69_s21 = int_to_ptr.vmem [resolvable:$true] %s68_s21 }
   0x6   :  { %s3658_s22 = scalar_lea.vmem %s45_s19, 32  ;;  %p3663_p1 = scmp.lt.s32.totalorder %s45_s19, %s45_s19 }
   0x7   :  { %p3659_p0 = scmp.ne.s32.totalorder %s45_s19, %s3658_s22  ;;  %p3664_p2 = scmp.lt.s32.totalorder %s3658_s22, %s3658_s22 }
   0x9   :  { %p3665_p3 = por %p3664_p2, %p3663_p1 }
   0xb   :  { %p3666_p4 = pnand %p3665_p3, %p3659_p0 }
   0xd   :  { %3669 = shalt.err (!%p3666_p4)
}
   0xe   :  { %47 = dma.hbm_to_vmem [thread:$0]  %s4921_s2, 32, %s45_s19, [#allocation6]  }
   0xf   :  { %s3678_s25 = scalar_lea.vmem %s69_s21, 32  ;;  %p3683_p6 = scmp.lt.s32.totalorder %s69_s21, %s69_s21 }
  0x10   :  { %p3679_p5 = scmp.ne.s32.totalorder %s69_s21, %s3678_s25  ;;  %p3684_p7 = scmp.lt.s32.totalorder %s3678_s25, %s3678_s25 }
  0x12   :  { %p3685_p8 = por %p3684_p7, %p3683_p6 }
  0x14   :  { %p3686_p9 = pnand %p3685_p8, %p3679_p5 }
  0x16   :  { %3689 = shalt.err (!%p3686_p9)
}
  0x17   :  { %71 = dma.hbm_to_vmem [thread:$0]  %s4925_s6, 32, %s69_s21, [#allocation9]  }
  0x18   :  { %s3802_s28 = smov [#allocation2]   ;;  %s3803_s30 = smov [#allocation7]  }
  0x19   :  { %s32_s29 = sshll.u32 %s3802_s28, 4  ;;  %s56_s16 = sshll.u32 %s3803_s30, 4  ;;  %s33_s29 = int_to_ptr.vmem [resolvable:$true] %s32_s29  ;;  %s57_s16 = int_to_ptr.vmem [resolvable:$true] %s56_s16 }
  0x1a   :  { %s3698_s17 = scalar_lea.vmem %s33_s29, 896  ;;  %p3703_p11 = scmp.lt.s32.totalorder %s33_s29, %s33_s29 }
  0x1b   :  { %p3699_p10 = scmp.ne.s32.totalorder %s33_s29, %s3698_s17  ;;  %p3704_p12 = scmp.lt.s32.totalorder %s3698_s17, %s3698_s17 }
  0x1d   :  { %p3705_p13 = por %p3704_p12, %p3703_p11 }
  0x1f   :  { %p3706_p0 = pnand %p3705_p13, %p3699_p10 }
  0x21   :  { %3709 = shalt.err (!%p3706_p0)
}
  0x22   :  { %35 = dma.hbm_to_vmem [thread:$0]  %s4919_s0, 896, %s33_s29, [#allocation3]  }
  0x23   :  { %s3718_s19 = scalar_lea.vmem %s57_s16, 32  ;;  %p3723_p2 = scmp.lt.s32.totalorder %s57_s16, %s57_s16 }
  0x24   :  { %p3719_p1 = scmp.ne.s32.totalorder %s57_s16, %s3718_s19  ;;  %p3724_p3 = scmp.lt.s32.totalorder %s3718_s19, %s3718_s19 }
  0x26   :  { %p3725_p4 = por %p3724_p3, %p3723_p2 }
  0x28   :  { %p3726_p5 = pnand %p3725_p4, %p3719_p1 }
  0x2a   :  { %3729 = shalt.err (!%p3726_p5)
}
  0x2b   :  { %59 = dma.hbm_to_vmem [thread:$0]  %s4923_s4, 32, %s57_s16, [#allocation6]  }
  0x2c   :  { %s3804_s21 = smov [#allocation10]  }
  0x2d   :  { %s80_s22 = sshll.u32 %s3804_s21, 4  ;;  %s81_s22 = int_to_ptr.vmem [resolvable:$true] %s80_s22 }
  0x2e   :  { %s3738_s23 = scalar_lea.vmem %s81_s22, 32  ;;  %p3743_p7 = scmp.lt.s32.totalorder %s81_s22, %s81_s22 }
  0x2f   :  { %p3739_p6 = scmp.ne.s32.totalorder %s81_s22, %s3738_s23  ;;  %p3744_p8 = scmp.lt.s32.totalorder %s3738_s23, %s3738_s23 }
  0x31   :  { %p3745_p9 = por %p3744_p8, %p3743_p7 }
  0x33   :  { %p3746_p10 = pnand %p3745_p9, %p3739_p6 }
  0x35   :  { %3749 = shalt.err (!%p3746_p10)
}
  0x36   :  { %83 = dma.hbm_to_vmem [thread:$0]  %s4927_s8, 32, %s81_s22, [#allocation9]  }
  0x37   :  { %3790 = dma.done.wait [#allocation3], 896  }
  0x38   :  { %3791 = vsyncadd [#allocation3], 4294966400 }
  0x39   :  { %3792 = dma.done.wait [#allocation6], 64  }
  0x3a   :  { %3793 = vsyncadd [#allocation6], 4294967232 }
  0x3b   :  { %3794 = dma.done.wait [#allocation9], 64  }
  0x3c   :  { %3795 = vsyncadd [#allocation9], 4294967232  ;;  %v3145_v0 = vld [vmem:[%s4920_s1 + $0x74] ss:$8 sps:$4 sm:$0xff]   ;;  %v3147_v1 = vld [vmem:[%s4920_s1 + $0x70] ss:$8 sps:$4 sm:$0xff]  }
  0x3d   :  { %728 = vmatprep.subr.bf16.mxu0 %v3145_v0  ;;  %v3148_v2 = vld [vmem:[%s4920_s1 + $0x174] ss:$8 sps:$4 sm:$0xff]   ;;  %v3150_v3 = vld [vmem:[%s4920_s1 + $0x170] ss:$8 sps:$4 sm:$0xff]   ;;  %v3151_v4 = vld [vmem:[%s4920_s1 + $0x64] ss:$8 sps:$4 sm:$0xff]  }
  0x3e   :  { %729 = vmatpush1.bf16.msra.mxu0 %v3147_v1  ;;  %v3153_v5 = vld [vmem:[%s4920_s1 + $0x60] ss:$8 sps:$4 sm:$0xff]   ;;  %769 = vmatprep.subr.bf16.mxu1 %v3148_v2  ;;  %v3154_v6 = vld [vmem:[%s4920_s1 + $0x164] ss:$8 sps:$4 sm:$0xff]   ;;  %v3157_v8 = vld [vmem:[%s4920_s1 + $0x54] ss:$8 sps:$4 sm:$0xff]  }
  0x3f   :  { %770 = vmatpush1.bf16.msra.mxu1 %v3150_v3  ;;  %730 = vmatprep.subr.bf16.mxu0 %v3151_v4  ;;  %v3156_v7 = vld [vmem:[%s4920_s1 + $0x160] ss:$8 sps:$4 sm:$0xff]   ;;  %v3159_v9 = vld [vmem:[%s4920_s1 + $0x50] ss:$8 sps:$4 sm:$0xff]   ;;  %v3160_v10 = vld [vmem:[%s4920_s1 + $0x154] ss:$8 sps:$4 sm:$0xff]  }
  0x40   :  { %771 = vmatprep.subr.bf16.mxu1 %v3154_v6  ;;  %v3163_v11 = vld [vmem:[%s4920_s1 + $0x44] ss:$8 sps:$4 sm:$0xff]   ;;  %v3162_v12 = vld [vmem:[%s4920_s1 + $0x150] ss:$8 sps:$4 sm:$0xff]   ;;  %v3165_v14 = vld [vmem:[%s4920_s1 + $0x40] ss:$8 sps:$4 sm:$0xff]  }
  0x41   :  { %v3166_v13 = vld [vmem:[%s4920_s1 + $0x144] ss:$8 sps:$4 sm:$0xff]   ;;  %v3169_v15 = vld [vmem:[%s4920_s1 + $0x34] ss:$8 sps:$4 sm:$0xff]   ;;  %v3168_v16 = vld [vmem:[%s4920_s1 + $0x140] ss:$8 sps:$4 sm:$0xff]  }
  0x42   :  { %731 = vmatpush1.bf16.msra.mxu0 %v3153_v5  ;;  %v3172_v17 = vld [vmem:[%s4920_s1 + $0x134] ss:$8 sps:$4 sm:$0xff]   ;;  %v3171_v18 = vld [vmem:[%s4920_s1 + $0x30] ss:$8 sps:$4 sm:$0xff]   ;;  %v3175_v19 = vld [vmem:[%s4920_s1 + $0x24] ss:$8 sps:$4 sm:$0xff]  }
  0x43   :  { %732 = vmatprep.subr.bf16.mxu0 %v3157_v8  ;;  %772 = vmatpush1.bf16.msra.mxu1 %v3156_v7  ;;  %v3174_v20 = vld [vmem:[%s4920_s1 + $0x130] ss:$8 sps:$4 sm:$0xff]   ;;  %v3178_v21 = vld [vmem:[%s4920_s1 + $0x124] ss:$8 sps:$4 sm:$0xff]   ;;  %v3177_v22 = vld [vmem:[%s4920_s1 + $0x20] ss:$8 sps:$4 sm:$0xff]  }
  0x44   :  { %773 = vmatprep.subr.bf16.mxu1 %v3160_v10  ;;  %v3181_v23 = vld [vmem:[%s4920_s1 + $0x14] ss:$8 sps:$4 sm:$0xff]   ;;  %v3180_v24 = vld [vmem:[%s4920_s1 + $0x120] ss:$8 sps:$4 sm:$0xff]   ;;  %v3183_v26 = vld [vmem:[%s4920_s1 + $0x10] ss:$8 sps:$4 sm:$0xff]  }
  0x45   :  { %v3184_v25 = vld [vmem:[%s4920_s1 + $0x114] ss:$8 sps:$4 sm:$0xff]   ;;  %v3187_v27 = vld [vmem:[%s4920_s1 + $0x4] ss:$8 sps:$4 sm:$0xff]   ;;  %v3186_v28 = vld [vmem:[%s4920_s1 + $0x110] ss:$8 sps:$4 sm:$0xff]  }
  0x46   :  { %733 = vmatpush1.bf16.msra.mxu0 %v3159_v9  ;;  %v3190_v29 = vld [vmem:[%s4920_s1 + $0x104] ss:$8 sps:$4 sm:$0xff]   ;;  %v3189_v30 = vld [vmem:[%s4920_s1] ss:$8 sps:$4 sm:$0xff]   ;;  %v3193_v31 = vld [vmem:[%s4920_s1 + $0xf4] ss:$8 sps:$4 sm:$0xff]  }
  0x47   :  { %734 = vmatprep.subr.bf16.mxu0 %v3163_v11  ;;  %774 = vmatpush1.bf16.msra.mxu1 %v3162_v12  ;;  %v3192_v32 = vld [vmem:[%s4920_s1 + $0x100] ss:$8 sps:$4 sm:$0xff]   ;;  %v3196_v33 = vld [vmem:[%s4920_s1 + $0x1f4] ss:$8 sps:$4 sm:$0xff]   ;;  %v3195_v34 = vld [vmem:[%s4920_s1 + $0xf0] ss:$8 sps:$4 sm:$0xff]  }
  0x48   :  { %775 = vmatprep.subr.bf16.mxu1 %v3166_v13  ;;  %v3199_v35 = vld [vmem:[%s4920_s1 + $0xe4] ss:$8 sps:$4 sm:$0xff]   ;;  %v3198_v36 = vld [vmem:[%s4920_s1 + $0x1f0] ss:$8 sps:$4 sm:$0xff]   ;;  %v3201_v38 = vld [vmem:[%s4920_s1 + $0xe0] ss:$8 sps:$4 sm:$0xff]  }
  0x49   :  { %v3202_v37 = vld [vmem:[%s4920_s1 + $0x1e4] ss:$8 sps:$4 sm:$0xff]   ;;  %v3205_v39 = vld [vmem:[%s4920_s1 + $0xd4] ss:$8 sps:$4 sm:$0xff]   ;;  %v3204_v40 = vld [vmem:[%s4920_s1 + $0x1e0] ss:$8 sps:$4 sm:$0xff]  }
  0x4a   :  { %735 = vmatpush1.bf16.msra.mxu0 %v3165_v14  ;;  %v3208_v41 = vld [vmem:[%s4920_s1 + $0x1d4] ss:$8 sps:$4 sm:$0xff]   ;;  %v3207_v42 = vld [vmem:[%s4920_s1 + $0xd0] ss:$8 sps:$4 sm:$0xff]   ;;  %v3211_v43 = vld [vmem:[%s4920_s1 + $0xc4] ss:$8 sps:$4 sm:$0xff]  }
  0x4b   :  { %736 = vmatprep.subr.bf16.mxu0 %v3169_v15  ;;  %776 = vmatpush1.bf16.msra.mxu1 %v3168_v16  ;;  %v3210_v44 = vld [vmem:[%s4920_s1 + $0x1d0] ss:$8 sps:$4 sm:$0xff]   ;;  %v3214_v45 = vld [vmem:[%s4920_s1 + $0x1c4] ss:$8 sps:$4 sm:$0xff]   ;;  %v3213_v47 = vld [vmem:[%s4920_s1 + $0xc0] ss:$8 sps:$4 sm:$0xff]  }
  0x4c   :  { %777 = vmatprep.subr.bf16.mxu1 %v3172_v17  ;;  %v111_v46 = vld [vmem:[#allocation2 + $0x8] sm:$0xff]  ;;  %v3217_v49 = vld [vmem:[%s4920_s1 + $0xb4] ss:$8 sps:$4 sm:$0xff]   ;;  %v3219_v54 = vld [vmem:[%s4920_s1 + $0xb0] ss:$8 sps:$4 sm:$0xff]   ;;  %vm724_vm0 = vcmask 130048  }
  0x4d   :  { %v118_v48 = vpack.c.bf16 %v111_v46, %v111_v46  ;;  %v113_v50 = vld [vmem:[#allocation2 + $0x18] sm:$0xff]  ;;  %v3216_v51 = vld [vmem:[%s4920_s1 + $0x1c0] ss:$8 sps:$4 sm:$0xff]   ;;  %v3223_v55 = vld [vmem:[%s4920_s1 + $0xa4] ss:$8 sps:$4 sm:$0xff]   ;;  %s3806_s28 = smov [#allocation12]  }
  0x4e   :  { %737 = vmatpush1.bf16.msra.mxu0 %v3171_v18  ;;  %v120_v52 = vpack.c.bf16 %v113_v50, %v113_v50  ;;  %v3220_v53 = vld [vmem:[%s4920_s1 + $0x1b4] ss:$8 sps:$4 sm:$0xff]   ;;  %v3222_v56 = vld [vmem:[%s4920_s1 + $0x1b0] ss:$8 sps:$4 sm:$0xff]   ;;  %v3226_v57 = vld [vmem:[%s4920_s1 + $0x1a4] ss:$8 sps:$4 sm:$0xff]  }
  0x4f   :  { %738 = vmatprep.subr.bf16.mxu0 %v3175_v19  ;;  %778 = vmatpush1.bf16.msra.mxu1 %v3174_v20  ;;  %v3225_v58 = vld [vmem:[%s4920_s1 + $0xa0] ss:$8 sps:$4 sm:$0xff]   ;;  %v3229_v59 = vld [vmem:[%s4920_s1 + $0x94] ss:$8 sps:$4 sm:$0xff]   ;;  %v3231_v62 = vld [vmem:[%s4920_s1 + $0x90] ss:$8 sps:$4 sm:$0xff]  }
  0x50   :  { %779 = vmatprep.subr.bf16.mxu1 %v3178_v21  ;;  %760 = vmatprep.mubr.bf16.mxu0 %v118_v48  ;;  %v3228_v60 = vld [vmem:[%s4920_s1 + $0x1a0] ss:$8 sps:$4 sm:$0xff]   ;;  %v3232_v61 = vld [vmem:[%s4920_s1 + $0x194] ss:$8 sps:$4 sm:$0xff]   ;;  %v3235_v63 = vld [vmem:[%s4920_s1 + $0x84] ss:$8 sps:$4 sm:$0xff]  }
  0x51   :  { %801 = vmatprep.mubr.bf16.mxu1 %v120_v52  ;;  %v3234_v0 = vld [vmem:[%s4920_s1 + $0x190] ss:$8 sps:$4 sm:$0xff]   ;;  %v3237_v1 = vld [vmem:[%s4920_s1 + $0x80] ss:$8 sps:$4 sm:$0xff]   ;;  %v3238_v2 = vld [vmem:[%s4920_s1 + $0x184] ss:$8 sps:$4 sm:$0xff]  }
  0x52   :  { %739 = vmatpush1.bf16.msra.mxu0 %v3177_v22  ;;  %v3240_v3 = vld [vmem:[%s4920_s1 + $0x180] ss:$8 sps:$4 sm:$0xff]   ;;  %v3243_v5 = vld [vmem:[%s4920_s1 + $0x274] ss:$8 sps:$4 sm:$0xff]   ;;  %v3241_v8 = vld [vmem:[%s4920_s1 + $0x270] ss:$8 sps:$4 sm:$0xff]  }
  0x53   :  { %740 = vmatprep.subr.bf16.mxu0 %v3181_v23  ;;  %780 = vmatpush1.bf16.msra.mxu1 %v3180_v24  ;;  %v110_v4 = vld [vmem:[#allocation2] sm:$0xff]  ;;  %v112_v6 = vld [vmem:[#allocation2 + $0x10] sm:$0xff]  ;;  %v115_v16 = vld [vmem:[#allocation2 + $0x28] sm:$0xff]  ;;  %v3805_v19 = vmov 0   ;;  %s2770_s29 = sshll.u32 %s3806_s28, 4  ;;  %s2771_s29 = int_to_ptr.vmem [resolvable:$true] %s2770_s29 }
  0x54   :  { %781 = vmatprep.subr.bf16.mxu1 %v3184_v25  ;;  %v117_v7 = vpack.c.bf16 %v110_v4, %v110_v4  ;;  %v3246_v9 = vld [vmem:[%s4920_s1 + $0x264] ss:$8 sps:$4 sm:$0xff]   ;;  %v119_v10 = vpack.c.bf16 %v112_v6, %v112_v6  ;;  %v3286_v11 = vld [vmem:[%s4920_s1 + $0x300] ss:$8 sps:$4 sm:$0xff]   ;;  %v3249_v14 = vld [vmem:[%s4920_s1 + $0x254] ss:$8 sps:$4 sm:$0xff]   ;;  %v122_v17 = vpack.c.bf16 %v115_v16, %v115_v16  ;;  %p3755_p12 = scmp.lt.s32.totalorder %s2771_s29, %s2771_s29 }
  0x55   :  { %v3288_v12 = vld [vmem:[%s4920_s1 + $0x304] ss:$8 sps:$4 sm:$0xff]   ;;  %v3244_v13 = vld [vmem:[%s4920_s1 + $0x260] ss:$8 sps:$4 sm:$0xff]   ;;  %v116_v15 = vld [vmem:[#allocation2 + $0x30] sm:$0xff]  ;;  %s3750_s8 = scalar_lea.vmem %s2771_s29, 256 }
  0x56   :  { %741 = vmatpush1.bf16.msra.mxu0 %v3183_v26  ;;  %v3247_v18 = vld [vmem:[%s4920_s1 + $0x250] ss:$8 sps:$4 sm:$0xff]   ;;  %v3252_v20 = vld [vmem:[%s4920_s1 + $0x244] ss:$8 sps:$4 sm:$0xff]   ;;  %v123_v21 = vpack.c.bf16 %v116_v15, %v116_v15  ;;  %v3250_v22 = vld [vmem:[%s4920_s1 + $0x240] ss:$8 sps:$4 sm:$0xff]   ;;  %p3751_p11 = scmp.ne.s32.totalorder %s2771_s29, %s3750_s8  ;;  %p3756_p13 = scmp.lt.s32.totalorder %s3750_s8, %s3750_s8 }
  0x57   :  { %742 = vmatprep.subr.bf16.mxu0 %v3187_v27  ;;  %782 = vmatpush1.bf16.msra.mxu1 %v3186_v28  ;;  %v3255_v23 = vld [vmem:[%s4920_s1 + $0x234] ss:$8 sps:$4 sm:$0xff]   ;;  %v3253_v24 = vld [vmem:[%s4920_s1 + $0x230] ss:$8 sps:$4 sm:$0xff]   ;;  %v3258_v25 = vld [vmem:[%s4920_s1 + $0x224] ss:$8 sps:$4 sm:$0xff]  }
  0x58   :  { %783 = vmatprep.subr.bf16.mxu1 %v3190_v29  ;;  %v3256_v26 = vld [vmem:[%s4920_s1 + $0x220] ss:$8 sps:$4 sm:$0xff]   ;;  %v3261_v27 = vld [vmem:[%s4920_s1 + $0x214] ss:$8 sps:$4 sm:$0xff]   ;;  %v3259_v28 = vld [vmem:[%s4920_s1 + $0x210] ss:$8 sps:$4 sm:$0xff]   ;;  %p3757_p0 = por %p3756_p13, %p3755_p12 }
  0x59   :  { %v3264_v29 = vld [vmem:[%s4920_s1 + $0x204] ss:$8 sps:$4 sm:$0xff]   ;;  %v3289_v46 = vld [vmem:[%s4920_s1 + $0x280] ss:$8 sps:$4 sm:$0xff]   ;;  %v3294_v50 = vld [vmem:[%s4922_s3 + $0x74] ss:$8 sps:$4 sm:$0xff]  }
  0x5a   :  { %743 = vmatpush1.bf16.msra.mxu0 %v3189_v30  ;;  %v3262_v30 = vld [vmem:[%s4920_s1 + $0x200] ss:$8 sps:$4 sm:$0xff]   ;;  %v3322_v6 = vld [vmem:[%s4922_s3 + $0xd0] ss:$8 sps:$4 sm:$0xff]   ;;  %v3339_v15 = vld [vmem:[%s4922_s3 + $0x84] ss:$8 sps:$4 sm:$0xff]   ;;  %p3758_p1 = pnand %p3757_p0, %p3751_p11 }
  0x5b   :  { %744 = vmatprep.subr.bf16.mxu0 %v3193_v31  ;;  %784 = vmatpush1.bf16.msra.mxu1 %v3192_v32  ;;  %v3267_v31 = vld [vmem:[%s4920_s1 + $0x2f4] ss:$8 sps:$4 sm:$0xff]   ;;  %v3265_v32 = vld [vmem:[%s4920_s1 + $0x2f0] ss:$8 sps:$4 sm:$0xff]   ;;  %v3295_v52 = vld [vmem:[%s4922_s3 + $0x60] ss:$8 sps:$4 sm:$0xff]  }
  0x5c   :  { %785 = vmatprep.subr.bf16.mxu1 %v3196_v33  ;;  %v3270_v33 = vld [vmem:[%s4920_s1 + $0x2e4] ss:$8 sps:$4 sm:$0xff]   ;;  %v3319_v4 = vld [vmem:[%s4922_s3 + $0xe0] ss:$8 sps:$4 sm:$0xff]  }
  0x5d   :  { %v3337_v16 = vld [vmem:[%s4922_s3 + $0x80] ss:$8 sps:$4 sm:$0xff]  }
  0x5e   :  { %745 = vmatpush2.bf16.msra.mxu0 %v3195_v34  ;;  %v3268_v34 = vld [vmem:[%s4920_s1 + $0x2e0] ss:$8 sps:$4 sm:$0xff]  }
  0x5f   :  { %746 = vmatprep.subr.bf16.mxu0 %v3199_v35  ;;  %786 = vmatpush2.bf16.msra.mxu1 %v3198_v36  ;;  %v3273_v35 = vld [vmem:[%s4920_s1 + $0x2d4] ss:$8 sps:$4 sm:$0xff]   ;;  %v3271_v36 = vld [vmem:[%s4920_s1 + $0x2d0] ss:$8 sps:$4 sm:$0xff]  }
  0x60   :  { %787 = vmatprep.subr.bf16.mxu1 %v3202_v37  ;;  %v3276_v37 = vld [vmem:[%s4920_s1 + $0x2c4] ss:$8 sps:$4 sm:$0xff]  }
  0x62   :  { %747 = vmatpush2.bf16.msra.mxu0 %v3201_v38  ;;  %v3274_v38 = vld [vmem:[%s4920_s1 + $0x2c0] ss:$8 sps:$4 sm:$0xff]  }
  0x63   :  { %748 = vmatprep.subr.bf16.mxu0 %v3205_v39  ;;  %788 = vmatpush2.bf16.msra.mxu1 %v3204_v40  ;;  %v3279_v39 = vld [vmem:[%s4920_s1 + $0x2b4] ss:$8 sps:$4 sm:$0xff]   ;;  %v3277_v40 = vld [vmem:[%s4920_s1 + $0x2b0] ss:$8 sps:$4 sm:$0xff]  }
  0x64   :  { %789 = vmatprep.subr.bf16.mxu1 %v3208_v41  ;;  %v3282_v41 = vld [vmem:[%s4920_s1 + $0x2a4] ss:$8 sps:$4 sm:$0xff]  }
  0x66   :  { %749 = vmatpush2.bf16.msra.mxu0 %v3207_v42  ;;  %v3280_v42 = vld [vmem:[%s4920_s1 + $0x2a0] ss:$8 sps:$4 sm:$0xff]  }
  0x67   :  { %750 = vmatprep.subr.bf16.mxu0 %v3211_v43  ;;  %790 = vmatpush2.bf16.msra.mxu1 %v3210_v44  ;;  %v3285_v43 = vld [vmem:[%s4920_s1 + $0x294] ss:$8 sps:$4 sm:$0xff]   ;;  %v3283_v44 = vld [vmem:[%s4920_s1 + $0x290] ss:$8 sps:$4 sm:$0xff]  }
  0x68   :  { %791 = vmatprep.subr.bf16.mxu1 %v3214_v45  ;;  %v3291_v45 = vld [vmem:[%s4920_s1 + $0x284] ss:$8 sps:$4 sm:$0xff]  }
  0x6a   :  { %751 = vmatpush2.bf16.msra.mxu0 %v3213_v47  ;;  %v114_v47 = vld [vmem:[#allocation2 + $0x20] sm:$0xff] }
  0x6b   :  { %752 = vmatprep.subr.bf16.mxu0 %v3217_v49  ;;  %792 = vmatpush2.bf16.msra.mxu1 %v3216_v51  ;;  %v121_v48 = vpack.c.bf16 %v114_v47, %v114_v47  ;;  %v3292_v49 = vld [vmem:[%s4922_s3 + $0x70] ss:$8 sps:$4 sm:$0xff]   ;;  %v3297_v51 = vld [vmem:[%s4922_s3 + $0x64] ss:$8 sps:$4 sm:$0xff]  }
  0x6c   :  { %793 = vmatprep.subr.bf16.mxu1 %v3220_v53  ;;  %v3300_v53 = vld [vmem:[%s4922_s3 + $0x54] ss:$8 sps:$4 sm:$0xff]  }
  0x6e   :  { %753 = vmatpush2.bf16.msra.mxu0 %v3219_v54  ;;  %v3298_v54 = vld [vmem:[%s4922_s3 + $0x50] ss:$8 sps:$4 sm:$0xff]  }
  0x6f   :  { %754 = vmatprep.subr.bf16.mxu0 %v3223_v55  ;;  %794 = vmatpush2.bf16.msra.mxu1 %v3222_v56  ;;  %v3303_v55 = vld [vmem:[%s4922_s3 + $0x44] ss:$8 sps:$4 sm:$0xff]   ;;  %v3301_v56 = vld [vmem:[%s4922_s3 + $0x40] ss:$8 sps:$4 sm:$0xff]  }
  0x70   :  { %795 = vmatprep.subr.bf16.mxu1 %v3226_v57  ;;  %v3306_v57 = vld [vmem:[%s4922_s3 + $0x34] ss:$8 sps:$4 sm:$0xff]  }
  0x72   :  { %755 = vmatpush2.bf16.msra.mxu0 %v3225_v58  ;;  %v3304_v58 = vld [vmem:[%s4922_s3 + $0x30] ss:$8 sps:$4 sm:$0xff]  }
  0x73   :  { %756 = vmatprep.subr.bf16.mxu0 %v3229_v59  ;;  %796 = vmatpush2.bf16.msra.mxu1 %v3228_v60  ;;  %v3309_v59 = vld [vmem:[%s4922_s3 + $0x24] ss:$8 sps:$4 sm:$0xff]   ;;  %v3307_v60 = vld [vmem:[%s4922_s3 + $0x20] ss:$8 sps:$4 sm:$0xff]  }
  0x74   :  { %797 = vmatprep.subr.bf16.mxu1 %v3232_v61  ;;  %v3312_v61 = vld [vmem:[%s4922_s3 + $0x14] ss:$8 sps:$4 sm:$0xff]  }
  0x76   :  { %757 = vmatpush2.bf16.msra.mxu0 %v3231_v62  ;;  %v3310_v62 = vld [vmem:[%s4922_s3 + $0x10] ss:$8 sps:$4 sm:$0xff]  }
  0x77   :  { %758 = vmatprep.subr.bf16.mxu0 %v3235_v63  ;;  %798 = vmatpush2.bf16.msra.mxu1 %v3234_v0  ;;  %v3315_v63 = vld [vmem:[%s4922_s3 + $0x4] ss:$8 sps:$4 sm:$0xff]   ;;  %v3313_v0 = vld [vmem:[%s4922_s3] ss:$8 sps:$4 sm:$0xff]  }
  0x78   :  { %799 = vmatprep.subr.bf16.mxu1 %v3238_v2  ;;  %v3316_v2 = vld [vmem:[%s4922_s3 + $0xf0] ss:$8 sps:$4 sm:$0xff]  }
  0x7a   :  { %759 = vmatpush2.bf16.msra.mxu0 %v3237_v1  ;;  %v3318_v1 = vld [vmem:[%s4922_s3 + $0xf4] ss:$8 sps:$4 sm:$0xff]  }
  0x7b   :  { %810 = vmatprep.subr.bf16.mxu0 %v3243_v5  ;;  %800 = vmatpush2.bf16.msra.mxu1 %v3240_v3  ;;  %v3321_v3 = vld [vmem:[%s4922_s3 + $0xe4] ss:$8 sps:$4 sm:$0xff]   ;;  %v3324_v5 = vld [vmem:[%s4922_s3 + $0xd4] ss:$8 sps:$4 sm:$0xff]  }
  0x7c   :  { %865 = vmatprep.subr.bf16.mxu1 %v3288_v12  ;;  %v3331_v12 = vld [vmem:[%s4922_s3 + $0xa0] ss:$8 sps:$4 sm:$0xff]  }
  0x7d   :  { %761 = vmatmul.mubr.bf16.vlgmr.msra.gmra.mxu0 %v117_v7  ;;  %v3327_v7 = vld [vmem:[%s4922_s3 + $0xc4] ss:$8 sps:$4 sm:$0xff]  }
  0x7e   :  { %811 = vmatpush1.bf16.msra.mxu0 %v3241_v8  ;;  %802 = vmatmul.mubr.bf16.vlgmr.msra.gmra.mxu1 %v119_v10  ;;  %v3325_v8 = vld [vmem:[%s4922_s3 + $0xc0] ss:$8 sps:$4 sm:$0xff]   ;;  %v3328_v10 = vld [vmem:[%s4922_s3 + $0xb0] ss:$8 sps:$4 sm:$0xff]  }
  0x7f   :  { %812 = vmatprep.subr.bf16.mxu0 %v3246_v9  ;;  %866 = vmatpush1.bf16.msra.mxu1 %v3286_v11  ;;  %v3330_v9 = vld [vmem:[%s4922_s3 + $0xb4] ss:$8 sps:$4 sm:$0xff]   ;;  %v3333_v11 = vld [vmem:[%s4922_s3 + $0xa4] ss:$8 sps:$4 sm:$0xff]  }
  0x80   :  { %883 = vmatprep.mubr.bf16.mxu1 %v3805_v19  ;;  %842 = vmatprep.mubr.bf16.mxu0 %v122_v17  ;;  %v3340_v17 = vld [vmem:[%s4924_s5 + $0x70] ss:$8 sps:$4 sm:$0xff]  }
  0x81   :  { %1100 = vmatprep.subr.bf16.mxu1 %v3294_v50 }
  0x82   :  { %813 = vmatpush1.bf16.msra.mxu0 %v3244_v13  ;;  %v3336_v13 = vld [vmem:[%s4922_s3 + $0x94] ss:$8 sps:$4 sm:$0xff]  }
  0x83   :  { %814 = vmatprep.subr.bf16.mxu0 %v3249_v14  ;;  %v3334_v14 = vld [vmem:[%s4922_s3 + $0x90] ss:$8 sps:$4 sm:$0xff]  }
  0x86   :  { %815 = vmatpush1.bf16.msra.mxu0 %v3247_v18  ;;  %2883 = vmatmul.mubr.msk.bf16.vlgmr.msra.gmra.mxu1 %vm724_vm0, %v123_v21  ;;  %v3342_v18 = vld [vmem:[%s4924_s5 + $0x74] ss:$8 sps:$4 sm:$0xff]   ;;  %v3343_v21 = vld [vmem:[%s4924_s5 + $0x60] ss:$8 sps:$4 sm:$0xff]  }
  0x87   :  { %816 = vmatprep.subr.bf16.mxu0 %v3252_v20  ;;  %1101 = vmatpush1.bf16.msra.mxu1 %v3292_v49  ;;  %v3345_v20 = vld [vmem:[%s4924_s5 + $0x64] ss:$8 sps:$4 sm:$0xff]  }
  0x88   :  { %1102 = vmatprep.subr.bf16.mxu1 %v3297_v51 }
  0x8a   :  { %817 = vmatpush1.bf16.msra.mxu0 %v3250_v22  ;;  %v3348_v22 = vld [vmem:[%s4924_s5 + $0x54] ss:$8 sps:$4 sm:$0xff]  }
  0x8b   :  { %818 = vmatprep.subr.bf16.mxu0 %v3255_v23  ;;  %1103 = vmatpush1.bf16.msra.mxu1 %v3295_v52  ;;  %v3346_v23 = vld [vmem:[%s4924_s5 + $0x50] ss:$8 sps:$4 sm:$0xff]  }
  0x8c   :  { %1104 = vmatprep.subr.bf16.mxu1 %v3300_v53 }
  0x8e   :  { %819 = vmatpush1.bf16.msra.mxu0 %v3253_v24  ;;  %v3351_v24 = vld [vmem:[%s4924_s5 + $0x44] ss:$8 sps:$4 sm:$0xff]  }
  0x8f   :  { %820 = vmatprep.subr.bf16.mxu0 %v3258_v25  ;;  %1105 = vmatpush1.bf16.msra.mxu1 %v3298_v54  ;;  %v3349_v25 = vld [vmem:[%s4924_s5 + $0x40] ss:$8 sps:$4 sm:$0xff]  }
  0x90   :  { %1106 = vmatprep.subr.bf16.mxu1 %v3303_v55 }
  0x92   :  { %821 = vmatpush1.bf16.msra.mxu0 %v3256_v26  ;;  %v3354_v26 = vld [vmem:[%s4924_s5 + $0x34] ss:$8 sps:$4 sm:$0xff]  }
  0x93   :  { %822 = vmatprep.subr.bf16.mxu0 %v3261_v27  ;;  %1107 = vmatpush1.bf16.msra.mxu1 %v3301_v56  ;;  %v3352_v27 = vld [vmem:[%s4924_s5 + $0x30] ss:$8 sps:$4 sm:$0xff]  }
  0x94   :  { %1108 = vmatprep.subr.bf16.mxu1 %v3306_v57 }
  0x96   :  { %823 = vmatpush1.bf16.msra.mxu0 %v3259_v28  ;;  %v3357_v28 = vld [vmem:[%s4924_s5 + $0x24] ss:$8 sps:$4 sm:$0xff]  }
  0x97   :  { %824 = vmatprep.subr.bf16.mxu0 %v3264_v29  ;;  %1109 = vmatpush1.bf16.msra.mxu1 %v3304_v58  ;;  %v3355_v29 = vld [vmem:[%s4924_s5 + $0x20] ss:$8 sps:$4 sm:$0xff]   ;;  %v224_v58 = vlaneseq }
  0x98   :  { %1110 = vmatprep.subr.bf16.mxu1 %v3309_v59 }
  0x99   :  { %v4379_v59 = vshrl.u32 %v224_v58, 7 }
  0x9a   :  { %825 = vmatpush1.bf16.msra.mxu0 %v3262_v30  ;;  %v3360_v30 = vld [vmem:[%s4924_s5 + $0x14] ss:$8 sps:$4 sm:$0xff]  }
  0x9b   :  { %826 = vmatprep.subr.bf16.mxu0 %v3267_v31  ;;  %1111 = vmatpush1.bf16.msra.mxu1 %v3307_v60  ;;  %v3358_v31 = vld [vmem:[%s4924_s5 + $0x10] ss:$8 sps:$4 sm:$0xff]   ;;  %v4382_v60 = vsub.s32 0, %v4379_v59 }
  0x9c   :  { %1112 = vmatprep.subr.bf16.mxu1 %v3312_v61  ;;  %v222_v61 = vld [vmem:[#allocation5] sm:$0x3] }
  0x9e   :  { %827 = vmatpush2.bf16.msra.mxu0 %v3265_v32  ;;  %v3363_v32 = vld [vmem:[%s4924_s5 + $0x4] ss:$8 sps:$4 sm:$0xff]  }
  0x9f   :  { %828 = vmatprep.subr.bf16.mxu0 %v3270_v33  ;;  %1113 = vmatpush1.bf16.msra.mxu1 %v3310_v62  ;;  %v3361_v33 = vld [vmem:[%s4924_s5] ss:$8 sps:$4 sm:$0xff]   ;;  %v4385_v62 = vsub.s32 1, %v4379_v59 }
  0xa0   :  { %1114 = vmatprep.subr.bf16.mxu1 %v3315_v63  ;;  %v227_v63 = vrot.slane %v222_v61, %v4382_v60 }
  0xa2   :  { %829 = vmatpush2.bf16.msra.mxu0 %v3268_v34  ;;  %v3366_v34 = vld [vmem:[%s4924_s5 + $0xf4] ss:$8 sps:$4 sm:$0xff]  }
  0xa3   :  { %830 = vmatprep.subr.bf16.mxu0 %v3273_v35  ;;  %1115 = vmatpush1.bf16.msra.mxu1 %v3313_v0  ;;  %v3364_v35 = vld [vmem:[%s4924_s5 + $0xf0] ss:$8 sps:$4 sm:$0xff]   ;;  %v231_v0 = vrot.slane %v222_v61, %v4385_v62 }
  0xa4   :  { %1116 = vmatprep.subr.bf16.mxu1 %v3318_v1 }
  0xa6   :  { %831 = vmatpush2.bf16.msra.mxu0 %v3271_v36  ;;  %v3369_v36 = vld [vmem:[%s4924_s5 + $0xe4] ss:$8 sps:$4 sm:$0xff]  }
  0xa7   :  { %832 = vmatprep.subr.bf16.mxu0 %v3276_v37  ;;  %1117 = vmatpush2.bf16.msra.mxu1 %v3316_v2  ;;  %v3367_v37 = vld [vmem:[%s4924_s5 + $0xe0] ss:$8 sps:$4 sm:$0xff]  }
  0xa8   :  { %1118 = vmatprep.subr.bf16.mxu1 %v3321_v3 }
  0xaa   :  { %833 = vmatpush2.bf16.msra.mxu0 %v3274_v38  ;;  %v3372_v38 = vld [vmem:[%s4924_s5 + $0xd4] ss:$8 sps:$4 sm:$0xff]  }
  0xab   :  { %834 = vmatprep.subr.bf16.mxu0 %v3279_v39  ;;  %1119 = vmatpush2.bf16.msra.mxu1 %v3319_v4  ;;  %v3370_v39 = vld [vmem:[%s4924_s5 + $0xd0] ss:$8 sps:$4 sm:$0xff]  }
  0xac   :  { %1120 = vmatprep.subr.bf16.mxu1 %v3324_v5 }
  0xae   :  { %835 = vmatpush2.bf16.msra.mxu0 %v3277_v40  ;;  %v3375_v40 = vld [vmem:[%s4924_s5 + $0xc4] ss:$8 sps:$4 sm:$0xff]  }
  0xaf   :  { %836 = vmatprep.subr.bf16.mxu0 %v3282_v41  ;;  %1121 = vmatpush2.bf16.msra.mxu1 %v3322_v6  ;;  %v3373_v41 = vld [vmem:[%s4924_s5 + $0xc0] ss:$8 sps:$4 sm:$0xff]  }
  0xb0   :  { %1122 = vmatprep.subr.bf16.mxu1 %v3327_v7 }
  0xb2   :  { %837 = vmatpush2.bf16.msra.mxu0 %v3280_v42  ;;  %v3378_v42 = vld [vmem:[%s4924_s5 + $0xb4] ss:$8 sps:$4 sm:$0xff]  }
  0xb3   :  { %838 = vmatprep.subr.bf16.mxu0 %v3285_v43  ;;  %1123 = vmatpush2.bf16.msra.mxu1 %v3325_v8  ;;  %v3376_v43 = vld [vmem:[%s4924_s5 + $0xb0] ss:$8 sps:$4 sm:$0xff]  }
  0xb4   :  { %1124 = vmatprep.subr.bf16.mxu1 %v3330_v9 }
  0xb6   :  { %839 = vmatpush2.bf16.msra.mxu0 %v3283_v44  ;;  %v3381_v44 = vld [vmem:[%s4924_s5 + $0xa4] ss:$8 sps:$4 sm:$0xff]  }
  0xb7   :  { %840 = vmatprep.subr.bf16.mxu0 %v3291_v45  ;;  %1125 = vmatpush2.bf16.msra.mxu1 %v3328_v10  ;;  %v3379_v45 = vld [vmem:[%s4924_s5 + $0xa0] ss:$8 sps:$4 sm:$0xff]  }
  0xb8   :  { %1126 = vmatprep.subr.bf16.mxu1 %v3333_v11 }
  0xba   :  { %841 = vmatpush2.bf16.msra.mxu0 %v3289_v46 }
  0xbb   :  { %1127 = vmatpush2.bf16.msra.mxu1 %v3331_v12  ;;  %1349 = vmatprep.subr.bf16.mxu0 %v3342_v18  ;;  %v3382_v18 = vld [vmem:[%s4924_s5 + $0x90] ss:$8 sps:$4 sm:$0xff]  }
  0xbc   :  { %1128 = vmatprep.subr.bf16.mxu1 %v3336_v13 }
  0xbd   :  { %843 = vmatmul.mubr.bf16.vlgmr.msra.gmra.mxu0 %v121_v48 }
  0xbe   :  { %1350 = vmatpush1.bf16.msra.mxu0 %v3340_v17  ;;  %v3384_v17 = vld [vmem:[%s4924_s5 + $0x94] ss:$8 sps:$4 sm:$0xff]  }
  0xbf   :  { %1129 = vmatpush2.bf16.msra.mxu1 %v3334_v14  ;;  %1351 = vmatprep.subr.bf16.mxu0 %v3345_v20  ;;  %v3387_v20 = vld [vmem:[%s4924_s5 + $0x84] ss:$8 sps:$4 sm:$0xff]  }
  0xc0   :  { %1130 = vmatprep.subr.bf16.mxu1 %v3339_v15 }
  0xc2   :  { %1352 = vmatpush1.bf16.msra.mxu0 %v3343_v21  ;;  %v3385_v21 = vld [vmem:[%s4924_s5 + $0x80] ss:$8 sps:$4 sm:$0xff]  }
  0xc3   :  { %1131 = vmatpush2.bf16.msra.mxu1 %v3337_v16  ;;  %1353 = vmatprep.subr.bf16.mxu0 %v3348_v22  ;;  %v3390_v22 = vld [vmem:[%s4926_s7 + $0x74] ss:$8 sps:$4 sm:$0xff]  }
  0xc4   :  { %1507 = vmatprep.subr.bf16.mxu1 %v3390_v22  ;;  %v3436_v22 = vld [vmem:[%s4928_s9 + $0xf0] ss:$8 sps:$4 sm:$0xff]  }
  0xc6   :  { %1354 = vmatpush1.bf16.msra.mxu0 %v3346_v23  ;;  %v928_v23 = vld [vmem:[#allocation7] sm:$0x3] }
  0xc7   :  { %1355 = vmatprep.subr.bf16.mxu0 %v3351_v24  ;;  %v933_v24 = vrot.slane %v928_v23, %v4382_v60 }
  0xca   :  { %1356 = vmatpush1.bf16.msra.mxu0 %v3349_v25  ;;  %v937_v25 = vrot.slane %v928_v23, %v4385_v62  ;;  %v3441_v23 = vld [vmem:[%s4928_s9 + $0xe4] ss:$8 sps:$4 sm:$0xff]  }
  0xcb   :  { %1357 = vmatprep.subr.bf16.mxu0 %v3354_v26 }
  0xce   :  { %1358 = vmatpush1.bf16.msra.mxu0 %v3352_v27 }
  0xcf   :  { %1359 = vmatprep.subr.bf16.mxu0 %v3357_v28 }
  0xd2   :  { %1360 = vmatpush1.bf16.msra.mxu0 %v3355_v29 }
  0xd3   :  { %1361 = vmatprep.subr.bf16.mxu0 %v3360_v30 }
  0xd6   :  { %1362 = vmatpush1.bf16.msra.mxu0 %v3358_v31 }
  0xd7   :  { %1363 = vmatprep.subr.bf16.mxu0 %v3363_v32 }
  0xda   :  { %1364 = vmatpush1.bf16.msra.mxu0 %v3361_v33 }
  0xdb   :  { %1365 = vmatprep.subr.bf16.mxu0 %v3366_v34 }
  0xde   :  { %1366 = vmatpush2.bf16.msra.mxu0 %v3364_v35 }
  0xdf   :  { %1367 = vmatprep.subr.bf16.mxu0 %v3369_v36  ;;  %v3393_v36 = vld [vmem:[%s4926_s7 + $0x64] ss:$8 sps:$4 sm:$0xff]  }
  0xe2   :  { %1368 = vmatpush2.bf16.msra.mxu0 %v3367_v37  ;;  %v3391_v37 = vld [vmem:[%s4926_s7 + $0x60] ss:$8 sps:$4 sm:$0xff]  }
  0xe3   :  { %1369 = vmatprep.subr.bf16.mxu0 %v3372_v38  ;;  %v3396_v38 = vld [vmem:[%s4926_s7 + $0x54] ss:$8 sps:$4 sm:$0xff]  }
  0xe6   :  { %1370 = vmatpush2.bf16.msra.mxu0 %v3370_v39  ;;  %v3394_v39 = vld [vmem:[%s4926_s7 + $0x50] ss:$8 sps:$4 sm:$0xff]  }
  0xe7   :  { %1371 = vmatprep.subr.bf16.mxu0 %v3375_v40  ;;  %v3399_v40 = vld [vmem:[%s4926_s7 + $0x44] ss:$8 sps:$4 sm:$0xff]  }
  0xea   :  { %1372 = vmatpush2.bf16.msra.mxu0 %v3373_v41  ;;  %v3397_v41 = vld [vmem:[%s4926_s7 + $0x40] ss:$8 sps:$4 sm:$0xff]  }
  0xeb   :  { %1373 = vmatprep.subr.bf16.mxu0 %v3378_v42  ;;  %v3402_v42 = vld [vmem:[%s4926_s7 + $0x34] ss:$8 sps:$4 sm:$0xff]  }
  0xee   :  { %1374 = vmatpush2.bf16.msra.mxu0 %v3376_v43  ;;  %v3400_v43 = vld [vmem:[%s4926_s7 + $0x30] ss:$8 sps:$4 sm:$0xff]  }
  0xef   :  { %1375 = vmatprep.subr.bf16.mxu0 %v3381_v44  ;;  %v3405_v44 = vld [vmem:[%s4926_s7 + $0x24] ss:$8 sps:$4 sm:$0xff]  }
  0xf2   :  { %1376 = vmatpush2.bf16.msra.mxu0 %v3379_v45  ;;  %v3403_v45 = vld [vmem:[%s4926_s7 + $0x20] ss:$8 sps:$4 sm:$0xff]  }
  0xf3   :  { %1377 = vmatprep.subr.bf16.mxu0 %v3384_v17  ;;  %v3432_v17 = vld [vmem:[%s4928_s9 + $0x14] ss:$8 sps:$4 sm:$0xff]  }
  0xf6   :  { %1378 = vmatpush2.bf16.msra.mxu0 %v3382_v18  ;;  %v3430_v18 = vld [vmem:[%s4928_s9 + $0x10] ss:$8 sps:$4 sm:$0xff]  }
  0xf7   :  { %1379 = vmatprep.subr.bf16.mxu0 %v3387_v20  ;;  %v3435_v20 = vld [vmem:[%s4928_s9 + $0x4] ss:$8 sps:$4 sm:$0xff]  }
  0xfa   :  { %1380 = vmatpush2.bf16.msra.mxu0 %v3385_v21  ;;  %v3433_v21 = vld [vmem:[%s4928_s9] ss:$8 sps:$4 sm:$0xff]  }
 0x13d   :  { %v762_v46 = vpop.f32.mrf.mxu0 }
 0x13e   :  { %v803_v48 = vpop.f32.mrf.mxu1  ;;  %v763_v1 = vadd.f32 %v762_v46, %v227_v63  ;;  %v3408_v46 = vld [vmem:[%s4926_s7 + $0x14] ss:$8 sps:$4 sm:$0xff]  }
 0x13f   :  { %v764_v47 = vpop.f32.mrf.mxu0 }
 0x140   :  { %v805_v50 = vpop.f32.mrf.mxu1  ;;  %v765_v2 = vadd.f32 %v764_v47, %v231_v0  ;;  %v804_v3 = vadd.f32 %v803_v48, %v763_v1  ;;  %v3406_v47 = vld [vmem:[%s4926_s7 + $0x10] ss:$8 sps:$4 sm:$0xff]   ;;  %v3411_v48 = vld [vmem:[%s4926_s7 + $0x4] ss:$8 sps:$4 sm:$0xff]  }
 0x141   :  { %v766_v49 = vpop.f32.mrf.mxu0  ;;  %v1395_v1 = vld [vmem:[%s4932_s13] sm:$0xff] }
 0x142   :  { %v807_v52 = vpop.f32.mrf.mxu1  ;;  %v806_v5 = vadd.f32 %v805_v50, %v765_v2  ;;  %v3409_v49 = vld [vmem:[%s4926_s7] ss:$8 sps:$4 sm:$0xff]   ;;  %v3414_v50 = vld [vmem:[%s4928_s9 + $0x74] ss:$8 sps:$4 sm:$0xff]  }
 0x143   :  { %v767_v51 = vpop.f32.mrf.mxu0 }
 0x144   :  { %v808_v53 = vpop.f32.mrf.mxu1  ;;  %v1177_v51 = vld [vmem:[#allocation8] sm:$0x3] }
 0x145   :  { %v1182_v52 = vrot.slane %v1177_v51, %v4382_v60  ;;  %v1186_v53 = vrot.slane %v1177_v51, %v4385_v62  ;;  %v3496_v51 = vld [vmem:[%s4930_s11 + $0x38] ss:$28 sps:$4 sm:$0xff]  }
 0x146   :  { %v885_v54 = vpop.f32.mrf.mxu1 }
 0x148   :  { %v887_v55 = vpop.f32.mrf.mxu1 }
 0x14a   :  { %v889_v56 = vpop.f32.mrf.mxu1 }
 0x14c   :  { %v890_v57 = vpop.f32.mrf.mxu1 }
 0x17d   :  { %v844_v4 = vpop.f32.mrf.mxu0 }
 0x17e   :  { %v845_v6 = vadd.f32 %v844_v4, %v804_v3 }
 0x17f   :  { %v846_v7 = vpop.f32.mrf.mxu0 }
 0x180   :  { %v886_v8 = vadd.f32 %v885_v54, %v845_v6  ;;  %v847_v9 = vadd.f32 %v846_v7, %v806_v5  ;;  %v3412_v5 = vld [vmem:[%s4928_s9 + $0x70] ss:$8 sps:$4 sm:$0xff]   ;;  %v3417_v7 = vld [vmem:[%s4928_s9 + $0x64] ss:$8 sps:$4 sm:$0xff]  }
 0x181   :  { %v848_v10 = vpop.f32.mrf.mxu0 }
 0x182   :  { %v888_v11 = vadd.f32 %v887_v55, %v847_v9  ;;  %v892_v12 = vmax.f32 %v886_v8, 0.0  ;;  %v3415_v8 = vld [vmem:[%s4928_s9 + $0x60] ss:$8 sps:$4 sm:$0xff]   ;;  %v3420_v9 = vld [vmem:[%s4928_s9 + $0x54] ss:$8 sps:$4 sm:$0xff]  }
 0x183   :  { %v849_v13 = vpop.f32.mrf.mxu0  ;;  %v3418_v10 = vld [vmem:[%s4928_s9 + $0x50] ss:$8 sps:$4 sm:$0xff]  }
 0x184   :  { %v893_v14 = vmax.f32 %v888_v11, 0.0  ;;  %v894_v16 = vpack.c.bf16 %v892_v12, %v892_v12  ;;  %v3423_v11 = vld [vmem:[%s4928_s9 + $0x44] ss:$8 sps:$4 sm:$0xff]   ;;  %v3421_v12 = vld [vmem:[%s4928_s9 + $0x40] ss:$8 sps:$4 sm:$0xff]  }
 0x185   :  { %v3426_v13 = vld [vmem:[%s4928_s9 + $0x34] ss:$8 sps:$4 sm:$0xff]  }
 0x186   :  { %v895_v15 = vpack.c.bf16 %v893_v14, %v893_v14  ;;  %v3424_v14 = vld [vmem:[%s4928_s9 + $0x30] ss:$8 sps:$4 sm:$0xff]  }
 0x188   :  { %1132 = vmatprep.mubr.bf16.mxu1 %v895_v15  ;;  %v3429_v15 = vld [vmem:[%s4928_s9 + $0x24] ss:$8 sps:$4 sm:$0xff]  }
 0x189   :  { %1133 = vmatmul.mubr.bf16.vlgmr.msra.gmra.mxu1 %v894_v16  ;;  %v3427_v16 = vld [vmem:[%s4928_s9 + $0x20] ss:$8 sps:$4 sm:$0xff]  }
 0x18a   :  { %1539 = vmatprep.mubr.bf16.mxu1 %v3805_v19  ;;  %v3388_v19 = vld [vmem:[%s4926_s7 + $0x70] ss:$8 sps:$4 sm:$0xff]  }
 0x18b   :  { %1508 = vmatpush1.bf16.msra.mxu1 %v3388_v19  ;;  %v3438_v19 = vld [vmem:[%s4928_s9 + $0xf4] ss:$8 sps:$4 sm:$0xff]  }
 0x18c   :  { %1509 = vmatprep.subr.bf16.mxu1 %v3393_v36  ;;  %v3457_v36 = vld [vmem:[%s4928_s9 + $0x80] ss:$8 sps:$4 sm:$0xff]  }
 0x18f   :  { %1510 = vmatpush1.bf16.msra.mxu1 %v3391_v37  ;;  %v3460_v37 = vld [vmem:[%s4930_s11 + $0x188] ss:$28 sps:$4 sm:$0xff]  }
 0x190   :  { %1511 = vmatprep.subr.bf16.mxu1 %v3396_v38  ;;  %v3462_v38 = vld [vmem:[%s4930_s11 + $0x18c] ss:$28 sps:$4 sm:$0xff]  }
 0x191   :  { %2542 = vmatprep.subr.bf16.mxu0 %v3462_v38  ;;  %v3523_v38 = vld [vmem:[%s4930_s11 + $0x2e0] ss:$28 sps:$4 sm:$0xff]  }
 0x193   :  { %1512 = vmatpush1.bf16.msra.mxu1 %v3394_v39  ;;  %v3465_v39 = vld [vmem:[%s4930_s11 + $0x194] ss:$28 sps:$4 sm:$0xff]  }
 0x194   :  { %1513 = vmatprep.subr.bf16.mxu1 %v3399_v40  ;;  %v3468_v40 = vld [vmem:[%s4930_s11 + $0x154] ss:$28 sps:$4 sm:$0xff]  }
 0x197   :  { %1514 = vmatpush1.bf16.msra.mxu1 %v3397_v41  ;;  %v3466_v41 = vld [vmem:[%s4930_s11 + $0x150] ss:$28 sps:$4 sm:$0xff]  }
 0x198   :  { %1515 = vmatprep.subr.bf16.mxu1 %v3402_v42  ;;  %v3474_v42 = vld [vmem:[%s4930_s11 + $0x11c] ss:$28 sps:$4 sm:$0xff]  }
 0x19b   :  { %1516 = vmatpush1.bf16.msra.mxu1 %v3400_v43  ;;  %v3472_v43 = vld [vmem:[%s4930_s11 + $0x118] ss:$28 sps:$4 sm:$0xff]  }
 0x19c   :  { %1517 = vmatprep.subr.bf16.mxu1 %v3405_v44  ;;  %v3480_v44 = vld [vmem:[%s4930_s11 + $0xe4] ss:$28 sps:$4 sm:$0xff]  }
 0x19f   :  { %1518 = vmatpush1.bf16.msra.mxu1 %v3403_v45  ;;  %v3478_v45 = vld [vmem:[%s4930_s11 + $0xe0] ss:$28 sps:$4 sm:$0xff]  }
 0x1a0   :  { %1519 = vmatprep.subr.bf16.mxu1 %v3408_v46  ;;  %v3486_v46 = vld [vmem:[%s4930_s11 + $0xac] ss:$28 sps:$4 sm:$0xff]  }
 0x1a3   :  { %1520 = vmatpush1.bf16.msra.mxu1 %v3406_v47  ;;  %v3484_v47 = vld [vmem:[%s4930_s11 + $0xa8] ss:$28 sps:$4 sm:$0xff]  }
 0x1a4   :  { %1521 = vmatprep.subr.bf16.mxu1 %v3411_v48  ;;  %v3492_v48 = vld [vmem:[%s4930_s11 + $0x74] ss:$28 sps:$4 sm:$0xff]  }
 0x1a7   :  { %1522 = vmatpush1.bf16.msra.mxu1 %v3409_v49  ;;  %v3490_v49 = vld [vmem:[%s4930_s11 + $0x70] ss:$28 sps:$4 sm:$0xff]  }
 0x1a8   :  { %1756 = vmatprep.subr.bf16.mxu1 %v3414_v50  ;;  %v3498_v50 = vld [vmem:[%s4930_s11 + $0x3c] ss:$28 sps:$4 sm:$0xff]  }
 0x249   :  { %v1134_v26 = vpop.f32.mrf.mxu1 }
 0x24a   :  { %v1135_v27 = vadd.f32 %v1134_v26, %v933_v24  ;;  %v3439_v24 = vld [vmem:[%s4928_s9 + $0xe0] ss:$8 sps:$4 sm:$0xff]   ;;  %v3442_v26 = vld [vmem:[%s4928_s9 + $0xd0] ss:$8 sps:$4 sm:$0xff]  }
 0x24b   :  { %v1136_v28 = vpop.f32.mrf.mxu1 }
 0x24c   :  { %v1137_v29 = vadd.f32 %v1136_v28, %v937_v25  ;;  %v1141_v30 = vmax.f32 %v1135_v27, 0.0  ;;  %v3444_v25 = vld [vmem:[%s4928_s9 + $0xd4] ss:$8 sps:$4 sm:$0xff]   ;;  %v3447_v27 = vld [vmem:[%s4928_s9 + $0xc4] ss:$8 sps:$4 sm:$0xff]  }
 0x24d   :  { %v1138_v31 = vpop.f32.mrf.mxu1  ;;  %v3445_v28 = vld [vmem:[%s4928_s9 + $0xc0] ss:$8 sps:$4 sm:$0xff]  }
 0x24e   :  { %v1142_v32 = vmax.f32 %v1137_v29, 0.0  ;;  %v1143_v35 = vpack.c.bf16 %v1141_v30, %v1141_v30  ;;  %v3450_v29 = vld [vmem:[%s4928_s9 + $0xb4] ss:$8 sps:$4 sm:$0xff]   ;;  %v3448_v30 = vld [vmem:[%s4928_s9 + $0xb0] ss:$8 sps:$4 sm:$0xff]  }
 0x24f   :  { %v1139_v33 = vpop.f32.mrf.mxu1  ;;  %v3453_v31 = vld [vmem:[%s4928_s9 + $0xa4] ss:$8 sps:$4 sm:$0xff]  }
 0x250   :  { %v1144_v34 = vpack.c.bf16 %v1142_v32, %v1142_v32  ;;  %v3451_v32 = vld [vmem:[%s4928_s9 + $0xa0] ss:$8 sps:$4 sm:$0xff]   ;;  %v3456_v33 = vld [vmem:[%s4928_s9 + $0x94] ss:$8 sps:$4 sm:$0xff]  }
 0x252   :  { %1381 = vmatprep.mubr.bf16.mxu0 %v1144_v34  ;;  %v3454_v34 = vld [vmem:[%s4928_s9 + $0x90] ss:$8 sps:$4 sm:$0xff]  }
 0x253   :  { %1382 = vmatmul.mubr.bf16.vlgmr.msra.gmra.mxu0 %v1143_v35  ;;  %v3459_v35 = vld [vmem:[%s4928_s9 + $0x84] ss:$8 sps:$4 sm:$0xff]  }
 0x254   :  { %2543 = vmatpush1.bf16.msra.mxu0 %v3460_v37  ;;  %v3525_v37 = vld [vmem:[%s4930_s11 + $0x2e4] ss:$28 sps:$4 sm:$0xff]  }
 0x255   :  { %2544 = vmatprep.subr.bf16.mxu0 %v3468_v40  ;;  %v3529_v40 = vld [vmem:[%s4930_s11 + $0x2a8] ss:$28 sps:$4 sm:$0xff]  }
 0x258   :  { %2545 = vmatpush1.bf16.msra.mxu0 %v3466_v41  ;;  %v3537_v41 = vld [vmem:[%s4930_s11 + $0x274] ss:$28 sps:$4 sm:$0xff]  }
 0x259   :  { %2546 = vmatprep.subr.bf16.mxu0 %v3474_v42  ;;  %v3535_v42 = vld [vmem:[%s4930_s11 + $0x270] ss:$28 sps:$4 sm:$0xff]  }
 0x25c   :  { %2547 = vmatpush1.bf16.msra.mxu0 %v3472_v43  ;;  %v3543_v43 = vld [vmem:[%s4930_s11 + $0x23c] ss:$28 sps:$4 sm:$0xff]  }
 0x25d   :  { %2548 = vmatprep.subr.bf16.mxu0 %v3480_v44  ;;  %v3541_v44 = vld [vmem:[%s4930_s11 + $0x238] ss:$28 sps:$4 sm:$0xff]  }
 0x260   :  { %2549 = vmatpush1.bf16.msra.mxu0 %v3478_v45  ;;  %v3546_v45 = vld [vmem:[%s4930_s11 + $0x1fc] ss:$28 sps:$4 sm:$0xff]  }
 0x261   :  { %2550 = vmatprep.subr.bf16.mxu0 %v3486_v46  ;;  %v3549_v46 = vld [vmem:[%s4930_s11 + $0x204] ss:$28 sps:$4 sm:$0xff]  }
 0x264   :  { %2551 = vmatpush1.bf16.msra.mxu0 %v3484_v47  ;;  %v3544_v47 = vld [vmem:[%s4930_s11 + $0x1f8] ss:$28 sps:$4 sm:$0xff]  }
 0x265   :  { %2552 = vmatprep.subr.bf16.mxu0 %v3492_v48  ;;  %v3547_v48 = vld [vmem:[%s4930_s11 + $0x200] ss:$28 sps:$4 sm:$0xff]  }
 0x268   :  { %2553 = vmatpush1.bf16.msra.mxu0 %v3490_v49  ;;  %v3552_v49 = vld [vmem:[%s4930_s11 + $0x1c4] ss:$28 sps:$4 sm:$0xff]  }
 0x269   :  { %2554 = vmatprep.subr.bf16.mxu0 %v3498_v50  ;;  %v3555_v50 = vld [vmem:[%s4930_s11 + $0x1cc] ss:$28 sps:$4 sm:$0xff]  }
 0x26c   :  { %2555 = vmatpush1.bf16.msra.mxu0 %v3496_v51  ;;  %v3550_v51 = vld [vmem:[%s4930_s11 + $0x1c0] ss:$28 sps:$4 sm:$0xff]  }
 0x313   :  { %v1383_v54 = vpop.f32.mrf.mxu0 }
 0x314   :  { %v1384_v55 = vadd.f32 %v1383_v54, %v1182_v52  ;;  %v3504_v52 = vld [vmem:[%s4930_s11 + $0x4] ss:$28 sps:$4 sm:$0xff]   ;;  %v3510_v54 = vld [vmem:[%s4930_s11 + $0x34c] ss:$28 sps:$4 sm:$0xff]  }
 0x315   :  { %v1385_v56 = vpop.f32.mrf.mxu0  ;;  %2556 = vmatprep.subr.bf16.mxu0 %v3504_v52  ;;  %v3553_v52 = vld [vmem:[%s4930_s11 + $0x1c8] ss:$28 sps:$4 sm:$0xff]  }
 0x316   :  { %1390 = vst [vmem:[#allocation12] sm:$0xff] %v1384_v55  ;;  %v1386_v57 = vadd.f32 %v1385_v56, %v1186_v53  ;;  %v3502_v53 = vld [vmem:[%s4930_s11] ss:$28 sps:$4 sm:$0xff]   ;;  %v3516_v56 = vld [vmem:[%s4930_s11 + $0x314] ss:$28 sps:$4 sm:$0xff]  }
 0x317   :  { %v1387_v58 = vpop.f32.mrf.mxu0  ;;  %2557 = vmatpush1.bf16.msra.mxu0 %v3502_v53  ;;  %v3558_v53 = vld [vmem:[%s4930_s11 + $0x19c] ss:$28 sps:$4 sm:$0xff]  }
 0x318   :  { %1391 = vst [vmem:[#allocation12 + $0x8] sm:$0xff] %v1386_v57  ;;  %v1392_v61 = vmul.f32 0.5, %v1386_v57  ;;  %2558 = vmatprep.subr.bf16.mxu0 %v3510_v54  ;;  %v3514_v57 = vld [vmem:[%s4930_s11 + $0x310] ss:$28 sps:$4 sm:$0xff]   ;;  %v3522_v58 = vld [vmem:[%s4930_s11 + $0x2dc] ss:$28 sps:$4 sm:$0xff]  }
 0x319   :  { %v1388_v63 = vpop.f32.mrf.mxu0  ;;  %v3559_v54 = vld [vmem:[%s4930_s11 + $0x360] ss:$28 sps:$4 sm:$0xff]  }
 0x31a   :  { %v1393_v0 = vmul.f32 1.442695, %v1392_v61  ;;  %v3520_v61 = vld [vmem:[%s4930_s11 + $0x2d8] ss:$28 sps:$4 sm:$0xff]   ;;  %v3528_v63 = vld [vmem:[%s4930_s11 + $0x2a4] ss:$28 sps:$4 sm:$0xff]  }
 0x31c   :  { %3620 = vpow2.f32 %v1393_v0  ;;  %v3526_v0 = vld [vmem:[%s4930_s11 + $0x2a0] ss:$28 sps:$4 sm:$0xff]  }
 0x329   :  { %v3621_v2 = vpop.eup %3620 }
 0x32a   :  { %v1396_v3 = vmul.f32 %v3621_v2, %v1395_v1  ;;  %v3534_v1 = vld [vmem:[%s4930_s11 + $0x26c] ss:$28 sps:$4 sm:$0xff]  }
 0x32b   :  { %v3532_v2 = vld [vmem:[%s4930_s11 + $0x268] ss:$28 sps:$4 sm:$0xff]  }
 0x32c   :  { %v1397_v4 = vadd.f32 %v1396_v3, %v1384_v55  ;;  %v3508_v55 = vld [vmem:[%s4930_s11 + $0x348] ss:$28 sps:$4 sm:$0xff]   ;;  %v3540_v3 = vld [vmem:[%s4930_s11 + $0x234] ss:$28 sps:$4 sm:$0xff]  }
 0x32d   :  { %2559 = vmatpush2.bf16.msra.mxu0 %v3508_v55  ;;  %v1584_v55 = vld [vmem:[%s4929_s10] sm:$0x3] }
 0x32e   :  { %v1398_v6 = vpack.c.bf16 %v1397_v4, %v1397_v4  ;;  %2560 = vmatprep.subr.bf16.mxu0 %v3516_v56  ;;  %v3538_v4 = vld [vmem:[%s4930_s11 + $0x230] ss:$28 sps:$4 sm:$0xff]   ;;  %v1589_v56 = vrot.slane %v1584_v55, %v4382_v60 }
 0x330   :  { %1540 = vmatmul.mubr.bf16.vlgmr.msra.gmra.mxu1 %v1398_v6 }
 0x331   :  { %1757 = vmatpush1.bf16.msra.mxu1 %v3412_v5  ;;  %2561 = vmatpush2.bf16.msra.mxu0 %v3514_v57  ;;  %v1415_v5 = vld [vmem:[#allocation10] sm:$0x3]  ;;  %v1593_v57 = vrot.slane %v1584_v55, %v4385_v62 }
 0x332   :  { %1758 = vmatprep.subr.bf16.mxu1 %v3417_v7  ;;  %2562 = vmatprep.subr.bf16.mxu0 %v3522_v58  ;;  %v1420_v6 = vrot.slane %v1415_v5, %v4382_v60  ;;  %v1424_v7 = vrot.slane %v1415_v5, %v4385_v62 }
 0x335   :  { %1759 = vmatpush1.bf16.msra.mxu1 %v3415_v8  ;;  %2563 = vmatpush2.bf16.msra.mxu0 %v3520_v61 }
 0x336   :  { %1760 = vmatprep.subr.bf16.mxu1 %v3420_v9  ;;  %2564 = vmatprep.subr.bf16.mxu0 %v3528_v63 }
 0x339   :  { %1761 = vmatpush1.bf16.msra.mxu1 %v3418_v10  ;;  %2565 = vmatpush2.bf16.msra.mxu0 %v3526_v0 }
 0x33a   :  { %1762 = vmatprep.subr.bf16.mxu1 %v3423_v11  ;;  %2566 = vmatprep.subr.bf16.mxu0 %v3534_v1 }
 0x33d   :  { %1763 = vmatpush1.bf16.msra.mxu1 %v3421_v12  ;;  %2567 = vmatpush2.bf16.msra.mxu0 %v3532_v2 }
 0x33e   :  { %1764 = vmatprep.subr.bf16.mxu1 %v3426_v13  ;;  %2568 = vmatprep.subr.bf16.mxu0 %v3540_v3 }
 0x341   :  { %1765 = vmatpush1.bf16.msra.mxu1 %v3424_v14  ;;  %2569 = vmatpush2.bf16.msra.mxu0 %v3538_v4 }
 0x342   :  { %1766 = vmatprep.subr.bf16.mxu1 %v3429_v15  ;;  %2570 = vmatprep.subr.bf16.mxu0 %v3546_v45  ;;  %v3610_v45 = vld [vmem:[%s4930_s11 + $0x27c] ss:$28 sps:$4 sm:$0xff]  }
 0x345   :  { %1767 = vmatpush1.bf16.msra.mxu1 %v3427_v16  ;;  %2571 = vmatpush2.bf16.msra.mxu0 %v3544_v47  ;;  %v3613_v47 = vld [vmem:[%s4930_s11 + $0x244] ss:$28 sps:$4 sm:$0xff]  }
 0x346   :  { %1768 = vmatprep.subr.bf16.mxu1 %v3432_v17  ;;  %v3463_v17 = vld [vmem:[%s4930_s11 + $0x190] ss:$28 sps:$4 sm:$0xff]   ;;  %2572 = vmatprep.subr.bf16.mxu0 %v3552_v49 }
 0x347   :  { %v3616_v49 = vld [vmem:[%s4930_s11 + $0x20c] ss:$28 sps:$4 sm:$0xff]  }
 0x349   :  { %1769 = vmatpush1.bf16.msra.mxu1 %v3430_v18  ;;  %2573 = vmatpush2.bf16.msra.mxu0 %v3550_v51  ;;  %v3619_v51 = vld [vmem:[%s4930_s11 + $0x1d4] ss:$28 sps:$4 sm:$0xff]  }
 0x34a   :  { %1770 = vmatprep.subr.bf16.mxu1 %v3435_v20  ;;  %v3471_v20 = vld [vmem:[%s4930_s11 + $0x15c] ss:$28 sps:$4 sm:$0xff]   ;;  %2624 = vmatprep.subr.bf16.mxu0 %v3558_v53 }
 0x34d   :  { %1771 = vmatpush1.bf16.msra.mxu1 %v3433_v21  ;;  %v3469_v21 = vld [vmem:[%s4930_s11 + $0x158] ss:$28 sps:$4 sm:$0xff]  }
 0x34e   :  { %1772 = vmatprep.subr.bf16.mxu1 %v3438_v19  ;;  %v3477_v19 = vld [vmem:[%s4930_s11 + $0x124] ss:$28 sps:$4 sm:$0xff]  }
 0x351   :  { %1773 = vmatpush2.bf16.msra.mxu1 %v3436_v22  ;;  %v3475_v22 = vld [vmem:[%s4930_s11 + $0x120] ss:$28 sps:$4 sm:$0xff]  }
 0x352   :  { %1774 = vmatprep.subr.bf16.mxu1 %v3441_v23  ;;  %v3483_v23 = vld [vmem:[%s4930_s11 + $0xec] ss:$28 sps:$4 sm:$0xff]  }
 0x355   :  { %1775 = vmatpush2.bf16.msra.mxu1 %v3439_v24  ;;  %v3481_v24 = vld [vmem:[%s4930_s11 + $0xe8] ss:$28 sps:$4 sm:$0xff]  }
 0x356   :  { %1776 = vmatprep.subr.bf16.mxu1 %v3444_v25  ;;  %v3489_v25 = vld [vmem:[%s4930_s11 + $0xb4] ss:$28 sps:$4 sm:$0xff]  }
 0x359   :  { %1777 = vmatpush2.bf16.msra.mxu1 %v3442_v26  ;;  %v3487_v26 = vld [vmem:[%s4930_s11 + $0xb0] ss:$28 sps:$4 sm:$0xff]  }
 0x35a   :  { %1778 = vmatprep.subr.bf16.mxu1 %v3447_v27  ;;  %v3495_v27 = vld [vmem:[%s4930_s11 + $0x7c] ss:$28 sps:$4 sm:$0xff]  }
 0x35d   :  { %1779 = vmatpush2.bf16.msra.mxu1 %v3445_v28  ;;  %v3493_v28 = vld [vmem:[%s4930_s11 + $0x78] ss:$28 sps:$4 sm:$0xff]  }
 0x35e   :  { %1780 = vmatprep.subr.bf16.mxu1 %v3450_v29  ;;  %v3501_v29 = vld [vmem:[%s4930_s11 + $0x44] ss:$28 sps:$4 sm:$0xff]  }
 0x361   :  { %1781 = vmatpush2.bf16.msra.mxu1 %v3448_v30  ;;  %v3499_v30 = vld [vmem:[%s4930_s11 + $0x40] ss:$28 sps:$4 sm:$0xff]  }
 0x362   :  { %1782 = vmatprep.subr.bf16.mxu1 %v3453_v31  ;;  %v3507_v31 = vld [vmem:[%s4930_s11 + $0xc] ss:$28 sps:$4 sm:$0xff]  }
 0x365   :  { %1783 = vmatpush2.bf16.msra.mxu1 %v3451_v32  ;;  %v3505_v32 = vld [vmem:[%s4930_s11 + $0x8] ss:$28 sps:$4 sm:$0xff]  }
 0x366   :  { %1784 = vmatprep.subr.bf16.mxu1 %v3456_v33  ;;  %v3513_v33 = vld [vmem:[%s4930_s11 + $0x354] ss:$28 sps:$4 sm:$0xff]  }
 0x369   :  { %1785 = vmatpush2.bf16.msra.mxu1 %v3454_v34  ;;  %v3511_v34 = vld [vmem:[%s4930_s11 + $0x350] ss:$28 sps:$4 sm:$0xff]  }
 0x36a   :  { %1786 = vmatprep.subr.bf16.mxu1 %v3459_v35  ;;  %v3519_v35 = vld [vmem:[%s4930_s11 + $0x31c] ss:$28 sps:$4 sm:$0xff]  }
 0x36d   :  { %1787 = vmatpush2.bf16.msra.mxu1 %v3457_v36  ;;  %v3517_v36 = vld [vmem:[%s4930_s11 + $0x318] ss:$28 sps:$4 sm:$0xff]  }
 0x36e   :  { %2583 = vmatprep.subr.bf16.mxu1 %v3465_v39  ;;  %v3531_v39 = vld [vmem:[%s4930_s11 + $0x2ac] ss:$28 sps:$4 sm:$0xff]  }
 0x3f0   :  { %v1541_v8 = vpop.f32.mrf.mxu1 }
 0x3f1   :  { %v1542_v9 = vadd.f32 %v1541_v8, %v1420_v6  ;;  %v3556_v6 = vld [vmem:[%s4930_s11 + $0x198] ss:$28 sps:$4 sm:$0xff]  }
 0x3f2   :  { %v1543_v10 = vpop.f32.mrf.mxu1 }
 0x3f3   :  { %v1544_v11 = vadd.f32 %v1543_v10, %v1424_v7  ;;  %v1548_v12 = vmax.f32 %v1542_v9, 0.0  ;;  %v3560_v7 = vld [vmem:[%s4930_s11 + $0x1a0] ss:$28 sps:$4 sm:$0xff]   ;;  %v3564_v10 = vld [vmem:[%s4930_s11 + $0x328] ss:$28 sps:$4 sm:$0xff]  }
 0x3f4   :  { %v1545_v13 = vpop.f32.mrf.mxu1  ;;  %v3563_v9 = vld [vmem:[%s4930_s11 + $0x164] ss:$28 sps:$4 sm:$0xff]  }
 0x3f5   :  { %v1549_v14 = vmax.f32 %v1544_v11, 0.0  ;;  %v1550_v18 = vpack.c.bf16 %v1548_v12, %v1548_v12  ;;  %v3561_v11 = vld [vmem:[%s4930_s11 + $0x160] ss:$28 sps:$4 sm:$0xff]   ;;  %v3565_v12 = vld [vmem:[%s4930_s11 + $0x168] ss:$28 sps:$4 sm:$0xff]  }
 0x3f6   :  { %v1546_v15 = vpop.f32.mrf.mxu1  ;;  %v3568_v13 = vld [vmem:[%s4930_s11 + $0x12c] ss:$28 sps:$4 sm:$0xff]  }
 0x3f7   :  { %v1551_v16 = vpack.c.bf16 %v1549_v14, %v1549_v14  ;;  %v3569_v14 = vld [vmem:[%s4930_s11 + $0x2f0] ss:$28 sps:$4 sm:$0xff]   ;;  %v3566_v15 = vld [vmem:[%s4930_s11 + $0x128] ss:$28 sps:$4 sm:$0xff]  }
 0x3f9   :  { %1788 = vmatprep.mubr.bf16.mxu1 %v1551_v16  ;;  %v3570_v16 = vld [vmem:[%s4930_s11 + $0x130] ss:$28 sps:$4 sm:$0xff]  }
 0x3fa   :  { %1789 = vmatmul.mubr.bf16.vlgmr.msra.gmra.mxu1 %v1550_v18  ;;  %v3574_v18 = vld [vmem:[%s4930_s11 + $0x2b8] ss:$28 sps:$4 sm:$0xff]  }
 0x3fb   :  { %2584 = vmatpush1.bf16.msra.mxu1 %v3463_v17  ;;  %v3573_v17 = vld [vmem:[%s4930_s11 + $0xf4] ss:$28 sps:$4 sm:$0xff]  }
 0x3fc   :  { %2585 = vmatprep.subr.bf16.mxu1 %v3471_v20  ;;  %v3571_v20 = vld [vmem:[%s4930_s11 + $0xf0] ss:$28 sps:$4 sm:$0xff]  }
 0x3ff   :  { %2586 = vmatpush1.bf16.msra.mxu1 %v3469_v21  ;;  %v3575_v21 = vld [vmem:[%s4930_s11 + $0xf8] ss:$28 sps:$4 sm:$0xff]  }
 0x400   :  { %2587 = vmatprep.subr.bf16.mxu1 %v3477_v19  ;;  %v3578_v19 = vld [vmem:[%s4930_s11 + $0xbc] ss:$28 sps:$4 sm:$0xff]  }
 0x403   :  { %2588 = vmatpush1.bf16.msra.mxu1 %v3475_v22  ;;  %v3579_v22 = vld [vmem:[%s4930_s11 + $0x280] ss:$28 sps:$4 sm:$0xff]  }
 0x404   :  { %2589 = vmatprep.subr.bf16.mxu1 %v3483_v23  ;;  %v3576_v23 = vld [vmem:[%s4930_s11 + $0xb8] ss:$28 sps:$4 sm:$0xff]  }
 0x407   :  { %2590 = vmatpush1.bf16.msra.mxu1 %v3481_v24  ;;  %v3580_v24 = vld [vmem:[%s4930_s11 + $0xc0] ss:$28 sps:$4 sm:$0xff]  }
 0x408   :  { %2591 = vmatprep.subr.bf16.mxu1 %v3489_v25  ;;  %v3583_v25 = vld [vmem:[%s4930_s11 + $0x84] ss:$28 sps:$4 sm:$0xff]  }
 0x40b   :  { %2592 = vmatpush1.bf16.msra.mxu1 %v3487_v26  ;;  %v3584_v26 = vld [vmem:[%s4930_s11 + $0x248] ss:$28 sps:$4 sm:$0xff]  }
 0x40c   :  { %2593 = vmatprep.subr.bf16.mxu1 %v3495_v27  ;;  %v3581_v27 = vld [vmem:[%s4930_s11 + $0x80] ss:$28 sps:$4 sm:$0xff]  }
 0x40f   :  { %2594 = vmatpush1.bf16.msra.mxu1 %v3493_v28  ;;  %v3585_v28 = vld [vmem:[%s4930_s11 + $0x88] ss:$28 sps:$4 sm:$0xff]  }
 0x410   :  { %2595 = vmatprep.subr.bf16.mxu1 %v3501_v29  ;;  %v3588_v29 = vld [vmem:[%s4930_s11 + $0x4c] ss:$28 sps:$4 sm:$0xff]  }
 0x413   :  { %2596 = vmatpush1.bf16.msra.mxu1 %v3499_v30  ;;  %v3589_v30 = vld [vmem:[%s4930_s11 + $0x210] ss:$28 sps:$4 sm:$0xff]  }
 0x414   :  { %2597 = vmatprep.subr.bf16.mxu1 %v3507_v31  ;;  %v3586_v31 = vld [vmem:[%s4930_s11 + $0x48] ss:$28 sps:$4 sm:$0xff]  }
 0x417   :  { %2598 = vmatpush1.bf16.msra.mxu1 %v3505_v32  ;;  %v3590_v32 = vld [vmem:[%s4930_s11 + $0x50] ss:$28 sps:$4 sm:$0xff]  }
 0x418   :  { %2599 = vmatprep.subr.bf16.mxu1 %v3513_v33  ;;  %v3593_v33 = vld [vmem:[%s4930_s11 + $0x14] ss:$28 sps:$4 sm:$0xff]  }
 0x41b   :  { %2600 = vmatpush2.bf16.msra.mxu1 %v3511_v34  ;;  %v3594_v34 = vld [vmem:[%s4930_s11 + $0x1d8] ss:$28 sps:$4 sm:$0xff]  }
 0x41c   :  { %2601 = vmatprep.subr.bf16.mxu1 %v3519_v35  ;;  %v3591_v35 = vld [vmem:[%s4930_s11 + $0x10] ss:$28 sps:$4 sm:$0xff]  }
 0x41f   :  { %2602 = vmatpush2.bf16.msra.mxu1 %v3517_v36  ;;  %v3595_v36 = vld [vmem:[%s4930_s11 + $0x18] ss:$28 sps:$4 sm:$0xff]  }
 0x420   :  { %2603 = vmatprep.subr.bf16.mxu1 %v3525_v37  ;;  %v3598_v37 = vld [vmem:[%s4930_s11 + $0x35c] ss:$28 sps:$4 sm:$0xff]  }
 0x423   :  { %2604 = vmatpush2.bf16.msra.mxu1 %v3523_v38  ;;  %v3596_v38 = vld [vmem:[%s4930_s11 + $0x358] ss:$28 sps:$4 sm:$0xff]  }
 0x424   :  { %2605 = vmatprep.subr.bf16.mxu1 %v3531_v39  ;;  %v3601_v39 = vld [vmem:[%s4930_s11 + $0x324] ss:$28 sps:$4 sm:$0xff]  }
 0x427   :  { %2606 = vmatpush2.bf16.msra.mxu1 %v3529_v40  ;;  %v3599_v40 = vld [vmem:[%s4930_s11 + $0x320] ss:$28 sps:$4 sm:$0xff]  }
 0x428   :  { %2607 = vmatprep.subr.bf16.mxu1 %v3537_v41  ;;  %v3604_v41 = vld [vmem:[%s4930_s11 + $0x2ec] ss:$28 sps:$4 sm:$0xff]  }
 0x42b   :  { %2608 = vmatpush2.bf16.msra.mxu1 %v3535_v42  ;;  %v3602_v42 = vld [vmem:[%s4930_s11 + $0x2e8] ss:$28 sps:$4 sm:$0xff]  }
 0x42c   :  { %2609 = vmatprep.subr.bf16.mxu1 %v3543_v43  ;;  %v3607_v43 = vld [vmem:[%s4930_s11 + $0x2b4] ss:$28 sps:$4 sm:$0xff]  }
 0x42f   :  { %2610 = vmatpush2.bf16.msra.mxu1 %v3541_v44  ;;  %v3605_v44 = vld [vmem:[%s4930_s11 + $0x2b0] ss:$28 sps:$4 sm:$0xff]  }
 0x430   :  { %2611 = vmatprep.subr.bf16.mxu1 %v3549_v46  ;;  %v3608_v46 = vld [vmem:[%s4930_s11 + $0x278] ss:$28 sps:$4 sm:$0xff]  }
 0x433   :  { %2612 = vmatpush2.bf16.msra.mxu1 %v3547_v48  ;;  %v3611_v48 = vld [vmem:[%s4930_s11 + $0x240] ss:$28 sps:$4 sm:$0xff]  }
 0x434   :  { %2613 = vmatprep.subr.bf16.mxu1 %v3555_v50  ;;  %v3614_v50 = vld [vmem:[%s4930_s11 + $0x208] ss:$28 sps:$4 sm:$0xff]  }
 0x437   :  { %2614 = vmatpush2.bf16.msra.mxu1 %v3553_v52  ;;  %v3617_v52 = vld [vmem:[%s4930_s11 + $0x1d0] ss:$28 sps:$4 sm:$0xff]  }
 0x438   :  { %3115 = vmatprep.subr.bf16.mxu1 %v3559_v54 }
 0x4ba   :  { %v1790_v58 = vpop.f32.mrf.mxu1 }
 0x4bb   :  { %v1791_v61 = vadd.f32 %v1790_v58, %v1589_v56 }
 0x4bc   :  { %v1792_v63 = vpop.f32.mrf.mxu1 }
 0x4bd   :  { %v1793_v0 = vadd.f32 %v1792_v63, %v1593_v57  ;;  %v1797_v1 = vmax.f32 %v1791_v61, 0.0 }
 0x4be   :  { %v1794_v2 = vpop.f32.mrf.mxu1 }
 0x4bf   :  { %v1798_v3 = vmax.f32 %v1793_v0, 0.0  ;;  %v4764_v8 = vpack.c.bf16 %v1797_v1, %v1797_v1 }
 0x4c0   :  { %v1795_v4 = vpop.f32.mrf.mxu1 }
 0x4c1   :  { %v1800_v5 = vpack.c.bf16 %v1798_v3, %v1798_v3 }
 0x4c3   :  { %2574 = vmatprep.mubr.bf16.mxu0 %v1800_v5  ;;  %2615 = vmatprep.mubr.bf16.mxu1 %v1800_v5 }
 0x4c4   :  { %2575 = vmatmul.mubr.bf16.vlgmr.msra.gmra.mxu0 %v4764_v8  ;;  %2616 = vmatmul.mubr.bf16.vlgmr.msra.gmra.mxu1 %v4764_v8 }
 0x4c5   :  { %2625 = vmatpush1.bf16.msra.mxu0 %v3556_v6  ;;  %3116 = vmatpush3.bf16.msra.mxu1 %v3560_v7 }
 0x4c6   :  { %2656 = vmatprep.mubr.bf16.mxu0 %v1800_v5  ;;  %2697 = vmatprep.mubr.bf16.mxu1 %v1800_v5 }
 0x4c7   :  { %2626 = vmatprep.subr.bf16.mxu0 %v3563_v9  ;;  %3117 = vmatprep.subr.bf16.mxu1 %v3564_v10 }
 0x4c9   :  { %2627 = vmatpush1.bf16.msra.mxu0 %v3561_v11  ;;  %3118 = vmatpush3.bf16.msra.mxu1 %v3565_v12 }
 0x4ca   :  { %2628 = vmatprep.subr.bf16.mxu0 %v3568_v13  ;;  %3119 = vmatprep.subr.bf16.mxu1 %v3569_v14 }
 0x4cd   :  { %2629 = vmatpush1.bf16.msra.mxu0 %v3566_v15  ;;  %3120 = vmatpush3.bf16.msra.mxu1 %v3570_v16 }
 0x4ce   :  { %2630 = vmatprep.subr.bf16.mxu0 %v3573_v17  ;;  %3121 = vmatprep.subr.bf16.mxu1 %v3574_v18 }
 0x4d1   :  { %2631 = vmatpush1.bf16.msra.mxu0 %v3571_v20  ;;  %3122 = vmatpush3.bf16.msra.mxu1 %v3575_v21 }
 0x4d2   :  { %2632 = vmatprep.subr.bf16.mxu0 %v3578_v19  ;;  %3123 = vmatprep.subr.bf16.mxu1 %v3579_v22 }
 0x4d5   :  { %2633 = vmatpush1.bf16.msra.mxu0 %v3576_v23  ;;  %3124 = vmatpush3.bf16.msra.mxu1 %v3580_v24 }
 0x4d6   :  { %2634 = vmatprep.subr.bf16.mxu0 %v3583_v25  ;;  %3125 = vmatprep.subr.bf16.mxu1 %v3584_v26 }
 0x4d9   :  { %2635 = vmatpush1.bf16.msra.mxu0 %v3581_v27  ;;  %3126 = vmatpush3.bf16.msra.mxu1 %v3585_v28 }
 0x4da   :  { %2636 = vmatprep.subr.bf16.mxu0 %v3588_v29  ;;  %3127 = vmatprep.subr.bf16.mxu1 %v3589_v30 }
 0x4dd   :  { %2637 = vmatpush1.bf16.msra.mxu0 %v3586_v31  ;;  %3128 = vmatpush3.bf16.msra.mxu1 %v3590_v32 }
 0x4de   :  { %2638 = vmatprep.subr.bf16.mxu0 %v3593_v33  ;;  %3129 = vmatprep.subr.bf16.mxu1 %v3594_v34 }
 0x4e1   :  { %2639 = vmatpush1.bf16.msra.mxu0 %v3591_v35  ;;  %3130 = vmatpush3.bf16.msra.mxu1 %v3595_v36 }
 0x4e2   :  { %2640 = vmatprep.subr.bf16.mxu0 %v3598_v37 }
 0x4e4   :  { %2698 = vmatmul.mubr.bf16.vlgmr.msra.gmra.mxu1 %v4764_v8 }
 0x4e5   :  { %2641 = vmatpush2.bf16.msra.mxu0 %v3596_v38 }
 0x4e6   :  { %2642 = vmatprep.subr.bf16.mxu0 %v3601_v39 }
 0x4e9   :  { %2643 = vmatpush2.bf16.msra.mxu0 %v3599_v40 }
 0x4ea   :  { %2644 = vmatprep.subr.bf16.mxu0 %v3604_v41 }
 0x4ed   :  { %2645 = vmatpush2.bf16.msra.mxu0 %v3602_v42 }
 0x4ee   :  { %2646 = vmatprep.subr.bf16.mxu0 %v3607_v43 }
 0x4f1   :  { %2647 = vmatpush2.bf16.msra.mxu0 %v3605_v44 }
 0x4f2   :  { %2648 = vmatprep.subr.bf16.mxu0 %v3610_v45 }
 0x4f5   :  { %2649 = vmatpush2.bf16.msra.mxu0 %v3608_v46 }
 0x4f6   :  { %2650 = vmatprep.subr.bf16.mxu0 %v3613_v47 }
 0x4f9   :  { %2651 = vmatpush2.bf16.msra.mxu0 %v3611_v48 }
 0x4fa   :  { %2652 = vmatprep.subr.bf16.mxu0 %v3616_v49 }
 0x4fd   :  { %2653 = vmatpush2.bf16.msra.mxu0 %v3614_v50 }
 0x4fe   :  { %2654 = vmatprep.subr.bf16.mxu0 %v3619_v51 }
 0x501   :  { %2655 = vmatpush2.bf16.msra.mxu0 %v3617_v52 }
 0x504   :  { %2657 = vmatmul.mubr.bf16.vlgmr.msra.gmra.mxu0 %v4764_v8 }
 0x505   :  { %3761 = shalt.err (!%p3758_p1)
}
 0x506   :  { %2773 = dma.vmem_to_hbm [thread:$0]  %s2771_s29, 256, %s4934_s15, [#allocation13]   ;;  %v1941_v53 = vsub.s32 2, %v4379_v59  ;;  %v1929_v54 = vld [vmem:[%s4931_s12] sm:$0x7f]  ;;  %v1945_v55 = vsub.s32 3, %v4379_v59 }
 0x507   :  { %v1934_v56 = vrot.slane %v1929_v54, %v4382_v60  ;;  %v1938_v58 = vrot.slane %v1929_v54, %v4385_v62  ;;  %v1957_v19 = vsub.s32 6, %v4379_v59  ;;  %v1949_v36 = vsub.s32 4, %v4379_v59  ;;  %s3807_s12 = smov [#allocation11]  }
 0x508   :  { %v1942_v57 = vrot.slane %v1929_v54, %v1941_v53  ;;  %v1946_v61 = vrot.slane %v1929_v54, %v1945_v55  ;;  %v1953_v37 = vsub.s32 5, %v4379_v59  ;;  %s2760_s15 = sshll.u32 %s3807_s12, 4  ;;  %s2761_s15 = int_to_ptr.vmem [resolvable:$true] %s2760_s15 }
 0x509   :  { %v1958_v23 = vrot.slane %v1929_v54, %v1957_v19  ;;  %v1950_v38 = vrot.slane %v1929_v54, %v1949_v36  ;;  %s3770_s13 = scalar_lea.vmem %s2761_s15, 896  ;;  %p3775_p3 = scmp.lt.s32.totalorder %s2761_s15, %s2761_s15 }
 0x50a   :  { %v1954_v39 = vrot.slane %v1929_v54, %v1953_v37  ;;  %p3771_p2 = scmp.ne.s32.totalorder %s2761_s15, %s3770_s13  ;;  %p3776_p4 = scmp.lt.s32.totalorder %s3770_s13, %s3770_s13 }
 0x50c   :  { %p3777_p5 = por %p3776_p4, %p3775_p3 }
 0x50e   :  { %p3778_p6 = pnand %p3777_p5, %p3771_p2 }
 0x584   :  { %v2576_v63 = vpop.f32.mrf.mxu0  ;;  %v2617_v0 = vpop.f32.mrf.mxu1 }
 0x585   :  { %v2577_v1 = vadd.f32 %v2576_v63, %v1934_v56  ;;  %v2618_v2 = vadd.f32 %v2617_v0, %v1942_v57 }
 0x586   :  { %v2578_v3 = vpop.f32.mrf.mxu0  ;;  %v2619_v4 = vpop.f32.mrf.mxu1 }
 0x587   :  { %v3108_v5 = vmul.f32 -1.442695, %v2577_v1  ;;  %v3110_v6 = vmul.f32 -1.442695, %v2618_v2  ;;  %v2579_v7 = vadd.f32 %v2578_v3, %v1938_v58  ;;  %v2620_v8 = vadd.f32 %v2619_v4, %v1946_v61 }
 0x588   :  { %v2580_v9 = vpop.f32.mrf.mxu0  ;;  %v2621_v10 = vpop.f32.mrf.mxu1 }
 0x589   :  { %3622 = vpow2.f32 %v3108_v5  ;;  %v3109_v11 = vmul.f32 -1.442695, %v2579_v7  ;;  %v3111_v12 = vmul.f32 -1.442695, %v2620_v8 }
 0x58a   :  { %3624 = vpow2.f32 %v3110_v6  ;;  %v2581_v60 = vpop.f32.mrf.mxu0  ;;  %v2622_v13 = vpop.f32.mrf.mxu1 }
 0x58b   :  { %3626 = vpow2.f32 %v3109_v11 }
 0x58c   :  { %3628 = vpow2.f32 %v3111_v12 }
 0x596   :  { %v3623_v62 = vpop.eup %3622 }
 0x597   :  { %v3625_v14 = vpop.eup %3624  ;;  %v2726_v15 = vadd.f32 1.0, %v3623_v62 }
 0x598   :  { %v3627_v16 = vpop.eup %3626  ;;  %v2728_v17 = vadd.f32 1.0, %v3625_v14 }
 0x599   :  { %v3629_v18 = vpop.eup %3628  ;;  %3630 = vrcp.f32 %v2726_v15  ;;  %v2727_v20 = vadd.f32 1.0, %v3627_v16 }
 0x59a   :  { %3632 = vrcp.f32 %v2728_v17  ;;  %v2729_v21 = vadd.f32 1.0, %v3629_v18 }
 0x59b   :  { %3634 = vrcp.f32 %v2727_v20 }
 0x59c   :  { %3636 = vrcp.f32 %v2729_v21 }
 0x5a4   :  { %v3131_v22 = vpop.f32.mrf.mxu1 }
 0x5a6   :  { %v3631_v24 = vpop.eup %3630  ;;  %v3132_v25 = vpop.f32.mrf.mxu1 }
 0x5a7   :  { %v3633_v26 = vpop.eup %3632  ;;  %2747 = vst [vmem:[#allocation11] sm:$0xff] %v3631_v24  ;;  %v3133_v27 = vadd.f32 %v3132_v25, %v3131_v22 }
 0x5a8   :  { %v3635_v28 = vpop.eup %3634  ;;  %2749 = vst [vmem:[#allocation11 + $0x10] sm:$0xff] %v3633_v26  ;;  %v3134_v29 = vpop.f32.mrf.mxu1 }
 0x5a9   :  { %v3637_v30 = vpop.eup %3636  ;;  %2748 = vst [vmem:[#allocation11 + $0x8] sm:$0xff] %v3635_v28  ;;  %v2700_v31 = vadd.f32 %v3133_v27, %v1958_v23 }
 0x5aa   :  { %2750 = vst [vmem:[#allocation11 + $0x18] sm:$0xff] %v3637_v30  ;;  %v3135_v32 = vpop.f32.mrf.mxu1 }
 0x5ab   :  { %v3114_v33 = vmul.f32 -1.442695, %v2700_v31 }
 0x5ad   :  { %3638 = vpow2.f32 %v3114_v33 }
 0x5ba   :  { %v3639_v34 = vpop.eup %3638 }
 0x5bb   :  { %v2732_v35 = vadd.f32 1.0, %v3639_v34 }
 0x5bd   :  { %3640 = vrcp.f32 %v2732_v35 }
 0x5c4   :  { %v2658_v40 = vpop.f32.mrf.mxu0 }
 0x5c5   :  { %v2659_v41 = vadd.f32 %v2658_v40, %v1950_v38 }
 0x5c6   :  { %v2660_v42 = vpop.f32.mrf.mxu0 }
 0x5c7   :  { %v3112_v43 = vmul.f32 -1.442695, %v2659_v41  ;;  %v2661_v44 = vadd.f32 %v2660_v42, %v1954_v39 }
 0x5c8   :  { %v2662_v45 = vpop.f32.mrf.mxu0 }
 0x5c9   :  { %3642 = vpow2.f32 %v3112_v43  ;;  %v3113_v46 = vmul.f32 -1.442695, %v2661_v44 }
 0x5ca   :  { %v3641_v47 = vpop.eup %3640  ;;  %v2663_v48 = vpop.f32.mrf.mxu0 }
 0x5cb   :  { %2753 = vst.msk [vmem:[#allocation11 + $0x30] sm:$0xff] %vm724_vm0, %v3641_v47  ;;  %3644 = vpow2.f32 %v3113_v46 }
 0x5d6   :  { %v3643_v49 = vpop.eup %3642 }
 0x5d7   :  { %v2730_v50 = vadd.f32 1.0, %v3643_v49 }
 0x5d8   :  { %v3645_v51 = vpop.eup %3644 }
 0x5d9   :  { %3646 = vrcp.f32 %v2730_v50  ;;  %v2731_v59 = vadd.f32 1.0, %v3645_v51 }
 0x5db   :  { %3648 = vrcp.f32 %v2731_v59 }
 0x5e6   :  { %v3647_v52 = vpop.eup %3646 }
 0x5e7   :  { %2751 = vst [vmem:[#allocation11 + $0x20] sm:$0xff] %v3647_v52 }
 0x5e8   :  { %v3649_v53 = vpop.eup %3648 }
 0x5e9   :  { %2752 = vst [vmem:[#allocation11 + $0x28] sm:$0xff] %v3649_v53 }
 0x5ea   :  { %3781 = shalt.err (!%p3778_p6)
}
 0x5eb   :  { %2763 = dma.vmem_to_hbm [thread:$0]  %s2761_s15, 896, %s4933_s14, [#allocation4]  }
 0x5ec   :  { %3796 = dma.done.wait [#allocation4], 896  }
 0x5ed   :  { %3797 = vsyncadd [#allocation4], 4294966400 }
 0x5ee   :  { %3798 = dma.done.wait [#allocation13], 256  }
 0x5ef   :  { %3799 = vsyncadd [#allocation13], 4294967040 }
 0x5f0   :  { %2780 = vsyncpa [#allocation3], 1 }
 0x5f1   :  { %2781 = vsyncpa [#allocation6], 1 }
 0x5f2   :  { %2782 = vsyncpa [#allocation9], 1 }
 0x5f3   :  { %2783 = vsyncpa [#allocation4], 1 }
 0x5f4   :  { %2784 = vsyncpa [#allocation13], 1 }

</bundles_post_ra>
